<compile_context>
chip_gen: v5e
topology: v5e:2x2
jax: 0.10.0
libtpu: 0.0.40
codegen_flags: <defaults>
</compile_context>

<pallas_src>
import jax
import jax.numpy as jnp
from jax.experimental import pallas as pl
from jax.experimental.pallas import tpu as pltpu


def _round_up(a, m):
    return ((a + m - 1) // m) * m


def _cellmlp_kernel(xt_ref, w1_ref, b1_ref, w2_ref, b2_ref, w3_ref, b3_ref,
                    out_ref):
    n_cells = xt_ref.shape[0]
    h2_dim = w2_ref.shape[0]
    tile_b = xt_ref.shape[2]

    # f32 per-batch pooling accumulator (sum over cells), lane-dense.
    s = jnp.zeros((h2_dim, tile_b), jnp.float32)
    for c in range(n_cells):              # static unroll; N is small
        x_c = xt_ref[c]                    # (D, tile_b) bf16
        # Layer 1: (H1, D) @ (D, tile_b) -> (H1, tile_b), f32 accumulate.
        h1 = jnp.dot(w1_ref[...], x_c, preferred_element_type=jnp.float32)
        h1 = jnp.maximum(h1 + b1_ref[...], 0.0)
        # Layer 2: (H2, H1) @ (H1, tile_b) -> (H2, tile_b).
        h2 = jnp.dot(w2_ref[...], h1.astype(jnp.bfloat16),
                     preferred_element_type=jnp.float32)
        h2 = jnp.maximum(h2 + b2_ref[...], 0.0)
        # TODO(synk): Dropout(p=0.2) is identity at inference; no mask applied.
        s = s + h2                         # f32 accumulation (no bf16 cast)

    # Output layer with 1/num_cells folded into w3: (1, H2) @ (H2, tile_b) + b3.
    out_ref[...] = (jnp.dot(w3_ref[...], s, preferred_element_type=jnp.float32)
                    + b3_ref[...])


def cellmlp_forward(x, params, *, tile_b_target=4096,
                    vmem_limit_bytes=32 * 1024 * 1024):
    """x: (batch, num_cells, input_size) f32. Returns (batch,) f32."""
    w1, b1, w2, b2, w3, b3 = params
    B, N, D = x.shape
    H1 = w1.shape[1]
    H2 = w2.shape[1]
    # No 128-padding of hidden dims; 16 keeps bf16 sublane packing happy and is
    # a no-op for the default hidden size of 64.
    H1p = _round_up(H1, 16)
    H2p = _round_up(H2, 16)

    # --- Tile selection: batch columns, lane-dense (multiple of 128). ---
    num_tiles = -(-B // max(int(tile_b_target), 1))
    tile_b = _round_up(-(-B // num_tiles), 128)
    b_pad = tile_b * num_tiles

    # --- Operand preparation (plain-JAX glue, outside the kernel). ---
    if b_pad != B:
        x = jnp.concatenate([x, jnp.zeros((b_pad - B, N, D), x.dtype)], axis=0)
    # (N, D, b_pad): cell axis leading (cheap static index inside the kernel),
    # batch on lanes; bf16 halves HBM bytes for the streamed operand.
    x_t = jnp.transpose(x, (1, 2, 0)).astype(jnp.bfloat16)

    # Transposed weights; padded rows/cols (if any) contribute exactly 0.
    w1t = jnp.zeros((H1p, D), jnp.bfloat16).at[:H1, :].set(
        w1.T.astype(jnp.bfloat16))
    b1t = jnp.zeros((H1p, 1), jnp.float32).at[:H1, 0].set(b1.reshape(-1))
    w2t = jnp.zeros((H2p, H1p), jnp.bfloat16).at[:H2, :H1].set(
        w2.T.astype(jnp.bfloat16))
    b2t = jnp.zeros((H2p, 1), jnp.float32).at[:H2, 0].set(b2.reshape(-1))
    # Mean-over-cells scale folded into the f32 output weights.
    w3t = jnp.zeros((1, H2p), jnp.float32).at[0, :H2].set(w3.reshape(-1) / N)
    b3r = jnp.asarray(b3, jnp.float32).reshape(1, 1)

    def const(shape):
        return pl.BlockSpec(shape, lambda i: (0, 0))   # all constants are 2-D

    flops = 2 * b_pad * N * (D * H1p + H1p * H2p) + 2 * b_pad * H2p
    bytes_accessed = (x_t.size * 2 + w1t.size * 2 + w2t.size * 2
                      + (b1t.size + b2t.size + w3t.size + b3r.size) * 4
                      + b_pad * 4)

    out = pl.pallas_call(
        _cellmlp_kernel,
        out_shape=jax.ShapeDtypeStruct((1, b_pad), jnp.float32),
        grid=(num_tiles,),
        in_specs=[
            pl.BlockSpec((N, D, tile_b), lambda i: (0, 0, i)),  # streamed x
            const(w1t.shape), const(b1t.shape),                 # resident
            const(w2t.shape), const(b2t.shape),
            const(w3t.shape), const(b3r.shape),
        ],
        out_specs=pl.BlockSpec((1, tile_b), lambda i: (0, i)),  # lane-dense out
        compiler_params=pltpu.CompilerParams(
            dimension_semantics=("parallel",),
            # Per-step VMEM is only a few MiB with these tiles, so one limit is
            # safe across v5e/v6e (128 MiB) and v7x (64 MiB/TC).
            vmem_limit_bytes=vmem_limit_bytes,
        ),
        cost_estimate=pl.CostEstimate(flops=flops, transcendentals=0,
                                      bytes_accessed=bytes_accessed),
    )(x_t, w1t, b1t, w2t, b2t, w3t, b3r)

    return out[0, :B]


def init_params(key, input_size=4, hidden_sizes=(64, 64)):
    """Deterministic synthetic params; layouts are (in, out) + (1, out) biases."""
    k1, k2, k3, k4, k5, k6 = jax.random.split(key, 6)
    h1, h2 = hidden_sizes
    s1 = 1.0 / jnp.sqrt(input_size)
    s2 = 1.0 / jnp.sqrt(h1)
    s3 = 1.0 / jnp.sqrt(h2)
    w1 = jax.random.uniform(k1, (input_size, h1), jnp.float32, -s1, s1)
    b1 = jax.random.uniform(k2, (1, h1), jnp.float32, -s1, s1)
    w2 = jax.random.uniform(k3, (h1, h2), jnp.float32, -s2, s2)
    b2 = jax.random.uniform(k4, (1, h2), jnp.float32, -s2, s2)
    w3 = jax.random.uniform(k5, (h2, 1), jnp.float32, -s3, s3)
    b3 = jax.random.uniform(k6, (1, 1), jnp.float32, -s3, s3)
    return w1, b1, w2, b2, w3, b3


def cellmlp_reference(x, params):
    """Pure-JAX f32 reference mirroring the PyTorch forward (eval mode)."""
    w1, b1, w2, b2, w3, b3 = params
    B, N, D = x.shape
    xf = x.reshape(-1, D)
    h1 = jnp.maximum(xf @ w1 + b1, 0.0)
    h2 = jnp.maximum(h1 @ w2 + b2, 0.0)
    y = (h2 @ w3 + b3).reshape(B, N)
    return jnp.sum(y, axis=1) / N


if __name__ == "__main__":
    key = jax.random.PRNGKey(0)
    kx, kp, kx2 = jax.random.split(key, 3)

    batch, num_cells, input_size = 2, 8, 4
    params = init_params(kp, input_size=input_size, hidden_sizes=(64, 64))

    # Small demo shape (single-tile path; batch padded up to one 128-lane tile).
    x = jax.random.normal(kx, (batch, num_cells, input_size), jnp.float32)
    out = jax.block_until_ready(cellmlp_forward(x, params))
    ref = cellmlp_reference(x, params)
    assert out.shape == (batch,)
    # bf16 MXU operands -> tolerance loosened vs. the f32 reference.
    assert jnp.allclose(out, ref, atol=2e-2, rtol=2e-2), (out, ref)

    # Non-multiple-of-128 batch with a small tile target to exercise the
    # multi-tile / padded / "parallel" grid path.
    big_batch = 500
    x2 = jax.random.normal(kx2, (big_batch, num_cells, input_size), jnp.float32)
    out2 = jax.block_until_ready(
        cellmlp_forward(x2, params, tile_b_target=128))
    ref2 = cellmlp_reference(x2, params)
    assert out2.shape == (big_batch,)
    assert jnp.allclose(out2, ref2, atol=2e-2, rtol=2e-2), (
        float(jnp.max(jnp.abs(out2 - ref2))))

    print("KERNEL_OK")
</pallas_src>

<mosaic_0001>
module attributes {stable_mosaic.version = 11 : i64} {
  func.func @_cellmlp_kernel(%arg0: i32, %arg1: memref<8x4x128xbf16, #tpu.memory_space<vmem>>, %arg2: memref<64x4xbf16, #tpu.memory_space<vmem>>, %arg3: memref<64x1xf32, #tpu.memory_space<vmem>>, %arg4: memref<64x64xbf16, #tpu.memory_space<vmem>>, %arg5: memref<64x1xf32, #tpu.memory_space<vmem>>, %arg6: memref<1x64xf32, #tpu.memory_space<vmem>>, %arg7: memref<1x1xf32, #tpu.memory_space<vmem>>, %arg8: memref<1x128xf32, #tpu.memory_space<vmem>>) attributes {dimension_semantics = [#tpu.dimension_semantics<parallel>], iteration_bounds = array<i64: 1>, scalar_prefetch = 0 : i64, scratch_operands = 0 : i64, tpu.core_type = #tpu.core_type<tc>, window_params = [{transform_indices = @transform_0, window_bounds = array<i64: 8, 4, 128>}, {pipeline_mode = #tpu.pipeline_mode<synchronous>, transform_indices = @transform_1, window_bounds = array<i64: 64, 4>}, {pipeline_mode = #tpu.pipeline_mode<synchronous>, transform_indices = @transform_2, window_bounds = array<i64: 64, 1>}, {pipeline_mode = #tpu.pipeline_mode<synchronous>, transform_indices = @transform_3, window_bounds = array<i64: 64, 64>}, {pipeline_mode = #tpu.pipeline_mode<synchronous>, transform_indices = @transform_4, window_bounds = array<i64: 64, 1>}, {pipeline_mode = #tpu.pipeline_mode<synchronous>, transform_indices = @transform_5, window_bounds = array<i64: 1, 64>}, {pipeline_mode = #tpu.pipeline_mode<synchronous>, transform_indices = @transform_6, window_bounds = array<i64: 1, 1>}, {transform_indices = @transform_7, window_bounds = array<i64: 1, 128>}]} {
    %cst = arith.constant 0.000000e+00 : f32
    %0 = vector.broadcast %cst : f32 to vector<64x128xf32>
    %c0 = arith.constant 0 : index
    %c0_0 = arith.constant 0 : index
    %c0_1 = arith.constant 0 : index
    %1 = vector.load %arg1[%c0, %c0_0, %c0_1] : memref<8x4x128xbf16, #tpu.memory_space<vmem>>, vector<1x4x128xbf16>
    %2 = vector.shape_cast %1 : vector<1x4x128xbf16> to vector<4x128xbf16>
    %c0_2 = arith.constant 0 : index
    %c0_3 = arith.constant 0 : index
    %3 = vector.load %arg2[%c0_2, %c0_3] : memref<64x4xbf16, #tpu.memory_space<vmem>>, vector<64x4xbf16>
    %cst_4 = arith.constant dense<0.000000e+00> : vector<64x128xf32>
    %4 = tpu.matmul %3, %2, %cst_4 {dimension_numbers = #tpu.dot_dimension_numbers<[1], [0], [0], [1], [0, 0, 1, 1], [], []>} : vector<64x4xbf16>, vector<4x128xbf16>, vector<64x128xf32> -> vector<64x128xf32>
    %c0_5 = arith.constant 0 : index
    %c0_6 = arith.constant 0 : index
    %5 = vector.load %arg3[%c0_5, %c0_6] : memref<64x1xf32, #tpu.memory_space<vmem>>, vector<64x1xf32>
    %6 = vector.broadcast %5 : vector<64x1xf32> to vector<64x128xf32>
    %7 = arith.addf %4, %6 : vector<64x128xf32>
    %cst_7 = arith.constant 0.000000e+00 : f32
    %8 = vector.broadcast %cst_7 : f32 to vector<64x128xf32>
    %9 = arith.maximumf %7, %8 : vector<64x128xf32>
    %c0_8 = arith.constant 0 : index
    %c0_9 = arith.constant 0 : index
    %10 = vector.load %arg4[%c0_8, %c0_9] : memref<64x64xbf16, #tpu.memory_space<vmem>>, vector<64x64xbf16>
    %11 = arith.truncf %9 : vector<64x128xf32> to vector<64x128xbf16>
    %cst_10 = arith.constant dense<0.000000e+00> : vector<64x128xf32>
    %12 = tpu.matmul %10, %11, %cst_10 {dimension_numbers = #tpu.dot_dimension_numbers<[1], [0], [0], [1], [0, 0, 1, 1], [], []>} : vector<64x64xbf16>, vector<64x128xbf16>, vector<64x128xf32> -> vector<64x128xf32>
    %c0_11 = arith.constant 0 : index
    %c0_12 = arith.constant 0 : index
    %13 = vector.load %arg5[%c0_11, %c0_12] : memref<64x1xf32, #tpu.memory_space<vmem>>, vector<64x1xf32>
    %14 = vector.broadcast %13 : vector<64x1xf32> to vector<64x128xf32>
    %15 = arith.addf %12, %14 : vector<64x128xf32>
    %cst_13 = arith.constant 0.000000e+00 : f32
    %16 = vector.broadcast %cst_13 : f32 to vector<64x128xf32>
    %17 = arith.maximumf %15, %16 : vector<64x128xf32>
    %18 = arith.addf %0, %17 : vector<64x128xf32>
    %c1 = arith.constant 1 : index
    %c0_14 = arith.constant 0 : index
    %c0_15 = arith.constant 0 : index
    %19 = vector.load %arg1[%c1, %c0_14, %c0_15] : memref<8x4x128xbf16, #tpu.memory_space<vmem>>, vector<1x4x128xbf16>
    %20 = vector.shape_cast %19 : vector<1x4x128xbf16> to vector<4x128xbf16>
    %c0_16 = arith.constant 0 : index
    %c0_17 = arith.constant 0 : index
    %21 = vector.load %arg2[%c0_16, %c0_17] : memref<64x4xbf16, #tpu.memory_space<vmem>>, vector<64x4xbf16>
    %cst_18 = arith.constant dense<0.000000e+00> : vector<64x128xf32>
    %22 = tpu.matmul %21, %20, %cst_18 {dimension_numbers = #tpu.dot_dimension_numbers<[1], [0], [0], [1], [0, 0, 1, 1], [], []>} : vector<64x4xbf16>, vector<4x128xbf16>, vector<64x128xf32> -> vector<64x128xf32>
    %c0_19 = arith.constant 0 : index
    %c0_20 = arith.constant 0 : index
    %23 = vector.load %arg3[%c0_19, %c0_20] : memref<64x1xf32, #tpu.memory_space<vmem>>, vector<64x1xf32>
    %24 = vector.broadcast %23 : vector<64x1xf32> to vector<64x128xf32>
    %25 = arith.addf %22, %24 : vector<64x128xf32>
    %cst_21 = arith.constant 0.000000e+00 : f32
    %26 = vector.broadcast %cst_21 : f32 to vector<64x128xf32>
    %27 = arith.maximumf %25, %26 : vector<64x128xf32>
    %c0_22 = arith.constant 0 : index
    %c0_23 = arith.constant 0 : index
    %28 = vector.load %arg4[%c0_22, %c0_23] : memref<64x64xbf16, #tpu.memory_space<vmem>>, vector<64x64xbf16>
    %29 = arith.truncf %27 : vector<64x128xf32> to vector<64x128xbf16>
    %cst_24 = arith.constant dense<0.000000e+00> : vector<64x128xf32>
    %30 = tpu.matmul %28, %29, %cst_24 {dimension_numbers = #tpu.dot_dimension_numbers<[1], [0], [0], [1], [0, 0, 1, 1], [], []>} : vector<64x64xbf16>, vector<64x128xbf16>, vector<64x128xf32> -> vector<64x128xf32>
    %c0_25 = arith.constant 0 : index
    %c0_26 = arith.constant 0 : index
    %31 = vector.load %arg5[%c0_25, %c0_26] : memref<64x1xf32, #tpu.memory_space<vmem>>, vector<64x1xf32>
    %32 = vector.broadcast %31 : vector<64x1xf32> to vector<64x128xf32>
    %33 = arith.addf %30, %32 : vector<64x128xf32>
    %cst_27 = arith.constant 0.000000e+00 : f32
    %34 = vector.broadcast %cst_27 : f32 to vector<64x128xf32>
    %35 = arith.maximumf %33, %34 : vector<64x128xf32>
    %36 = arith.addf %18, %35 : vector<64x128xf32>
    %c2 = arith.constant 2 : index
    %c0_28 = arith.constant 0 : index
    %c0_29 = arith.constant 0 : index
    %37 = vector.load %arg1[%c2, %c0_28, %c0_29] : memref<8x4x128xbf16, #tpu.memory_space<vmem>>, vector<1x4x128xbf16>
    %38 = vector.shape_cast %37 : vector<1x4x128xbf16> to vector<4x128xbf16>
    %c0_30 = arith.constant 0 : index
    %c0_31 = arith.constant 0 : index
    %39 = vector.load %arg2[%c0_30, %c0_31] : memref<64x4xbf16, #tpu.memory_space<vmem>>, vector<64x4xbf16>
    %cst_32 = arith.constant dense<0.000000e+00> : vector<64x128xf32>
    %40 = tpu.matmul %39, %38, %cst_32 {dimension_numbers = #tpu.dot_dimension_numbers<[1], [0], [0], [1], [0, 0, 1, 1], [], []>} : vector<64x4xbf16>, vector<4x128xbf16>, vector<64x128xf32> -> vector<64x128xf32>
    %c0_33 = arith.constant 0 : index
    %c0_34 = arith.constant 0 : index
    %41 = vector.load %arg3[%c0_33, %c0_34] : memref<64x1xf32, #tpu.memory_space<vmem>>, vector<64x1xf32>
    %42 = vector.broadcast %41 : vector<64x1xf32> to vector<64x128xf32>
    %43 = arith.addf %40, %42 : vector<64x128xf32>
    %cst_35 = arith.constant 0.000000e+00 : f32
    %44 = vector.broadcast %cst_35 : f32 to vector<64x128xf32>
    %45 = arith.maximumf %43, %44 : vector<64x128xf32>
    %c0_36 = arith.constant 0 : index
    %c0_37 = arith.constant 0 : index
    %46 = vector.load %arg4[%c0_36, %c0_37] : memref<64x64xbf16, #tpu.memory_space<vmem>>, vector<64x64xbf16>
    %47 = arith.truncf %45 : vector<64x128xf32> to vector<64x128xbf16>
    %cst_38 = arith.constant dense<0.000000e+00> : vector<64x128xf32>
    %48 = tpu.matmul %46, %47, %cst_38 {dimension_numbers = #tpu.dot_dimension_numbers<[1], [0], [0], [1], [0, 0, 1, 1], [], []>} : vector<64x64xbf16>, vector<64x128xbf16>, vector<64x128xf32> -> vector<64x128xf32>
    %c0_39 = arith.constant 0 : index
    %c0_40 = arith.constant 0 : index
    %49 = vector.load %arg5[%c0_39, %c0_40] : memref<64x1xf32, #tpu.memory_space<vmem>>, vector<64x1xf32>
    %50 = vector.broadcast %49 : vector<64x1xf32> to vector<64x128xf32>
    %51 = arith.addf %48, %50 : vector<64x128xf32>
    %cst_41 = arith.constant 0.000000e+00 : f32
    %52 = vector.broadcast %cst_41 : f32 to vector<64x128xf32>
    %53 = arith.maximumf %51, %52 : vector<64x128xf32>
    %54 = arith.addf %36, %53 : vector<64x128xf32>
    %c3 = arith.constant 3 : index
    %c0_42 = arith.constant 0 : index
    %c0_43 = arith.constant 0 : index
    %55 = vector.load %arg1[%c3, %c0_42, %c0_43] : memref<8x4x128xbf16, #tpu.memory_space<vmem>>, vector<1x4x128xbf16>
    %56 = vector.shape_cast %55 : vector<1x4x128xbf16> to vector<4x128xbf16>
    %c0_44 = arith.constant 0 : index
    %c0_45 = arith.constant 0 : index
    %57 = vector.load %arg2[%c0_44, %c0_45] : memref<64x4xbf16, #tpu.memory_space<vmem>>, vector<64x4xbf16>
    %cst_46 = arith.constant dense<0.000000e+00> : vector<64x128xf32>
    %58 = tpu.matmul %57, %56, %cst_46 {dimension_numbers = #tpu.dot_dimension_numbers<[1], [0], [0], [1], [0, 0, 1, 1], [], []>} : vector<64x4xbf16>, vector<4x128xbf16>, vector<64x128xf32> -> vector<64x128xf32>
    %c0_47 = arith.constant 0 : index
    %c0_48 = arith.constant 0 : index
    %59 = vector.load %arg3[%c0_47, %c0_48] : memref<64x1xf32, #tpu.memory_space<vmem>>, vector<64x1xf32>
    %60 = vector.broadcast %59 : vector<64x1xf32> to vector<64x128xf32>
    %61 = arith.addf %58, %60 : vector<64x128xf32>
    %cst_49 = arith.constant 0.000000e+00 : f32
    %62 = vector.broadcast %cst_49 : f32 to vector<64x128xf32>
    %63 = arith.maximumf %61, %62 : vector<64x128xf32>
    %c0_50 = arith.constant 0 : index
    %c0_51 = arith.constant 0 : index
    %64 = vector.load %arg4[%c0_50, %c0_51] : memref<64x64xbf16, #tpu.memory_space<vmem>>, vector<64x64xbf16>
    %65 = arith.truncf %63 : vector<64x128xf32> to vector<64x128xbf16>
    %cst_52 = arith.constant dense<0.000000e+00> : vector<64x128xf32>
    %66 = tpu.matmul %64, %65, %cst_52 {dimension_numbers = #tpu.dot_dimension_numbers<[1], [0], [0], [1], [0, 0, 1, 1], [], []>} : vector<64x64xbf16>, vector<64x128xbf16>, vector<64x128xf32> -> vector<64x128xf32>
    %c0_53 = arith.constant 0 : index
    %c0_54 = arith.constant 0 : index
    %67 = vector.load %arg5[%c0_53, %c0_54] : memref<64x1xf32, #tpu.memory_space<vmem>>, vector<64x1xf32>
    %68 = vector.broadcast %67 : vector<64x1xf32> to vector<64x128xf32>
    %69 = arith.addf %66, %68 : vector<64x128xf32>
    %cst_55 = arith.constant 0.000000e+00 : f32
    %70 = vector.broadcast %cst_55 : f32 to vector<64x128xf32>
    %71 = arith.maximumf %69, %70 : vector<64x128xf32>
    %72 = arith.addf %54, %71 : vector<64x128xf32>
    %c4 = arith.constant 4 : index
    %c0_56 = arith.constant 0 : index
    %c0_57 = arith.constant 0 : index
    %73 = vector.load %arg1[%c4, %c0_56, %c0_57] : memref<8x4x128xbf16, #tpu.memory_space<vmem>>, vector<1x4x128xbf16>
    %74 = vector.shape_cast %73 : vector<1x4x128xbf16> to vector<4x128xbf16>
    %c0_58 = arith.constant 0 : index
    %c0_59 = arith.constant 0 : index
    %75 = vector.load %arg2[%c0_58, %c0_59] : memref<64x4xbf16, #tpu.memory_space<vmem>>, vector<64x4xbf16>
    %cst_60 = arith.constant dense<0.000000e+00> : vector<64x128xf32>
    %76 = tpu.matmul %75, %74, %cst_60 {dimension_numbers = #tpu.dot_dimension_numbers<[1], [0], [0], [1], [0, 0, 1, 1], [], []>} : vector<64x4xbf16>, vector<4x128xbf16>, vector<64x128xf32> -> vector<64x128xf32>
    %c0_61 = arith.constant 0 : index
    %c0_62 = arith.constant 0 : index
    %77 = vector.load %arg3[%c0_61, %c0_62] : memref<64x1xf32, #tpu.memory_space<vmem>>, vector<64x1xf32>
    %78 = vector.broadcast %77 : vector<64x1xf32> to vector<64x128xf32>
    %79 = arith.addf %76, %78 : vector<64x128xf32>
    %cst_63 = arith.constant 0.000000e+00 : f32
    %80 = vector.broadcast %cst_63 : f32 to vector<64x128xf32>
    %81 = arith.maximumf %79, %80 : vector<64x128xf32>
    %c0_64 = arith.constant 0 : index
    %c0_65 = arith.constant 0 : index
    %82 = vector.load %arg4[%c0_64, %c0_65] : memref<64x64xbf16, #tpu.memory_space<vmem>>, vector<64x64xbf16>
    %83 = arith.truncf %81 : vector<64x128xf32> to vector<64x128xbf16>
    %cst_66 = arith.constant dense<0.000000e+00> : vector<64x128xf32>
    %84 = tpu.matmul %82, %83, %cst_66 {dimension_numbers = #tpu.dot_dimension_numbers<[1], [0], [0], [1], [0, 0, 1, 1], [], []>} : vector<64x64xbf16>, vector<64x128xbf16>, vector<64x128xf32> -> vector<64x128xf32>
    %c0_67 = arith.constant 0 : index
    %c0_68 = arith.constant 0 : index
    %85 = vector.load %arg5[%c0_67, %c0_68] : memref<64x1xf32, #tpu.memory_space<vmem>>, vector<64x1xf32>
    %86 = vector.broadcast %85 : vector<64x1xf32> to vector<64x128xf32>
    %87 = arith.addf %84, %86 : vector<64x128xf32>
    %cst_69 = arith.constant 0.000000e+00 : f32
    %88 = vector.broadcast %cst_69 : f32 to vector<64x128xf32>
    %89 = arith.maximumf %87, %88 : vector<64x128xf32>
    %90 = arith.addf %72, %89 : vector<64x128xf32>
    %c5 = arith.constant 5 : index
    %c0_70 = arith.constant 0 : index
    %c0_71 = arith.constant 0 : index
    %91 = vector.load %arg1[%c5, %c0_70, %c0_71] : memref<8x4x128xbf16, #tpu.memory_space<vmem>>, vector<1x4x128xbf16>
    %92 = vector.shape_cast %91 : vector<1x4x128xbf16> to vector<4x128xbf16>
    %c0_72 = arith.constant 0 : index
    %c0_73 = arith.constant 0 : index
    %93 = vector.load %arg2[%c0_72, %c0_73] : memref<64x4xbf16, #tpu.memory_space<vmem>>, vector<64x4xbf16>
    %cst_74 = arith.constant dense<0.000000e+00> : vector<64x128xf32>
    %94 = tpu.matmul %93, %92, %cst_74 {dimension_numbers = #tpu.dot_dimension_numbers<[1], [0], [0], [1], [0, 0, 1, 1], [], []>} : vector<64x4xbf16>, vector<4x128xbf16>, vector<64x128xf32> -> vector<64x128xf32>
    %c0_75 = arith.constant 0 : index
    %c0_76 = arith.constant 0 : index
    %95 = vector.load %arg3[%c0_75, %c0_76] : memref<64x1xf32, #tpu.memory_space<vmem>>, vector<64x1xf32>
    %96 = vector.broadcast %95 : vector<64x1xf32> to vector<64x128xf32>
    %97 = arith.addf %94, %96 : vector<64x128xf32>
    %cst_77 = arith.constant 0.000000e+00 : f32
    %98 = vector.broadcast %cst_77 : f32 to vector<64x128xf32>
    %99 = arith.maximumf %97, %98 : vector<64x128xf32>
    %c0_78 = arith.constant 0 : index
    %c0_79 = arith.constant 0 : index
    %100 = vector.load %arg4[%c0_78, %c0_79] : memref<64x64xbf16, #tpu.memory_space<vmem>>, vector<64x64xbf16>
    %101 = arith.truncf %99 : vector<64x128xf32> to vector<64x128xbf16>
    %cst_80 = arith.constant dense<0.000000e+00> : vector<64x128xf32>
    %102 = tpu.matmul %100, %101, %cst_80 {dimension_numbers = #tpu.dot_dimension_numbers<[1], [0], [0], [1], [0, 0, 1, 1], [], []>} : vector<64x64xbf16>, vector<64x128xbf16>, vector<64x128xf32> -> vector<64x128xf32>
    %c0_81 = arith.constant 0 : index
    %c0_82 = arith.constant 0 : index
    %103 = vector.load %arg5[%c0_81, %c0_82] : memref<64x1xf32, #tpu.memory_space<vmem>>, vector<64x1xf32>
    %104 = vector.broadcast %103 : vector<64x1xf32> to vector<64x128xf32>
    %105 = arith.addf %102, %104 : vector<64x128xf32>
    %cst_83 = arith.constant 0.000000e+00 : f32
    %106 = vector.broadcast %cst_83 : f32 to vector<64x128xf32>
    %107 = arith.maximumf %105, %106 : vector<64x128xf32>
    %108 = arith.addf %90, %107 : vector<64x128xf32>
    %c6 = arith.constant 6 : index
    %c0_84 = arith.constant 0 : index
    %c0_85 = arith.constant 0 : index
    %109 = vector.load %arg1[%c6, %c0_84, %c0_85] : memref<8x4x128xbf16, #tpu.memory_space<vmem>>, vector<1x4x128xbf16>
    %110 = vector.shape_cast %109 : vector<1x4x128xbf16> to vector<4x128xbf16>
    %c0_86 = arith.constant 0 : index
    %c0_87 = arith.constant 0 : index
    %111 = vector.load %arg2[%c0_86, %c0_87] : memref<64x4xbf16, #tpu.memory_space<vmem>>, vector<64x4xbf16>
    %cst_88 = arith.constant dense<0.000000e+00> : vector<64x128xf32>
    %112 = tpu.matmul %111, %110, %cst_88 {dimension_numbers = #tpu.dot_dimension_numbers<[1], [0], [0], [1], [0, 0, 1, 1], [], []>} : vector<64x4xbf16>, vector<4x128xbf16>, vector<64x128xf32> -> vector<64x128xf32>
    %c0_89 = arith.constant 0 : index
    %c0_90 = arith.constant 0 : index
    %113 = vector.load %arg3[%c0_89, %c0_90] : memref<64x1xf32, #tpu.memory_space<vmem>>, vector<64x1xf32>
    %114 = vector.broadcast %113 : vector<64x1xf32> to vector<64x128xf32>
    %115 = arith.addf %112, %114 : vector<64x128xf32>
    %cst_91 = arith.constant 0.000000e+00 : f32
    %116 = vector.broadcast %cst_91 : f32 to vector<64x128xf32>
    %117 = arith.maximumf %115, %116 : vector<64x128xf32>
    %c0_92 = arith.constant 0 : index
    %c0_93 = arith.constant 0 : index
    %118 = vector.load %arg4[%c0_92, %c0_93] : memref<64x64xbf16, #tpu.memory_space<vmem>>, vector<64x64xbf16>
    %119 = arith.truncf %117 : vector<64x128xf32> to vector<64x128xbf16>
    %cst_94 = arith.constant dense<0.000000e+00> : vector<64x128xf32>
    %120 = tpu.matmul %118, %119, %cst_94 {dimension_numbers = #tpu.dot_dimension_numbers<[1], [0], [0], [1], [0, 0, 1, 1], [], []>} : vector<64x64xbf16>, vector<64x128xbf16>, vector<64x128xf32> -> vector<64x128xf32>
    %c0_95 = arith.constant 0 : index
    %c0_96 = arith.constant 0 : index
    %121 = vector.load %arg5[%c0_95, %c0_96] : memref<64x1xf32, #tpu.memory_space<vmem>>, vector<64x1xf32>
    %122 = vector.broadcast %121 : vector<64x1xf32> to vector<64x128xf32>
    %123 = arith.addf %120, %122 : vector<64x128xf32>
    %cst_97 = arith.constant 0.000000e+00 : f32
    %124 = vector.broadcast %cst_97 : f32 to vector<64x128xf32>
    %125 = arith.maximumf %123, %124 : vector<64x128xf32>
    %126 = arith.addf %108, %125 : vector<64x128xf32>
    %c7 = arith.constant 7 : index
    %c0_98 = arith.constant 0 : index
    %c0_99 = arith.constant 0 : index
    %127 = vector.load %arg1[%c7, %c0_98, %c0_99] : memref<8x4x128xbf16, #tpu.memory_space<vmem>>, vector<1x4x128xbf16>
    %128 = vector.shape_cast %127 : vector<1x4x128xbf16> to vector<4x128xbf16>
    %c0_100 = arith.constant 0 : index
    %c0_101 = arith.constant 0 : index
    %129 = vector.load %arg2[%c0_100, %c0_101] : memref<64x4xbf16, #tpu.memory_space<vmem>>, vector<64x4xbf16>
    %cst_102 = arith.constant dense<0.000000e+00> : vector<64x128xf32>
    %130 = tpu.matmul %129, %128, %cst_102 {dimension_numbers = #tpu.dot_dimension_numbers<[1], [0], [0], [1], [0, 0, 1, 1], [], []>} : vector<64x4xbf16>, vector<4x128xbf16>, vector<64x128xf32> -> vector<64x128xf32>
    %c0_103 = arith.constant 0 : index
    %c0_104 = arith.constant 0 : index
    %131 = vector.load %arg3[%c0_103, %c0_104] : memref<64x1xf32, #tpu.memory_space<vmem>>, vector<64x1xf32>
    %132 = vector.broadcast %131 : vector<64x1xf32> to vector<64x128xf32>
    %133 = arith.addf %130, %132 : vector<64x128xf32>
    %cst_105 = arith.constant 0.000000e+00 : f32
    %134 = vector.broadcast %cst_105 : f32 to vector<64x128xf32>
    %135 = arith.maximumf %133, %134 : vector<64x128xf32>
    %c0_106 = arith.constant 0 : index
    %c0_107 = arith.constant 0 : index
    %136 = vector.load %arg4[%c0_106, %c0_107] : memref<64x64xbf16, #tpu.memory_space<vmem>>, vector<64x64xbf16>
    %137 = arith.truncf %135 : vector<64x128xf32> to vector<64x128xbf16>
    %cst_108 = arith.constant dense<0.000000e+00> : vector<64x128xf32>
    %138 = tpu.matmul %136, %137, %cst_108 {dimension_numbers = #tpu.dot_dimension_numbers<[1], [0], [0], [1], [0, 0, 1, 1], [], []>} : vector<64x64xbf16>, vector<64x128xbf16>, vector<64x128xf32> -> vector<64x128xf32>
    %c0_109 = arith.constant 0 : index
    %c0_110 = arith.constant 0 : index
    %139 = vector.load %arg5[%c0_109, %c0_110] : memref<64x1xf32, #tpu.memory_space<vmem>>, vector<64x1xf32>
    %140 = vector.broadcast %139 : vector<64x1xf32> to vector<64x128xf32>
    %141 = arith.addf %138, %140 : vector<64x128xf32>
    %cst_111 = arith.constant 0.000000e+00 : f32
    %142 = vector.broadcast %cst_111 : f32 to vector<64x128xf32>
    %143 = arith.maximumf %141, %142 : vector<64x128xf32>
    %144 = arith.addf %126, %143 : vector<64x128xf32>
    %c0_112 = arith.constant 0 : index
    %c0_113 = arith.constant 0 : index
    %145 = vector.load %arg6[%c0_112, %c0_113] : memref<1x64xf32, #tpu.memory_space<vmem>>, vector<1x64xf32>
    %cst_114 = arith.constant dense<0.000000e+00> : vector<1x128xf32>
    %146 = tpu.matmul %145, %144, %cst_114 {dimension_numbers = #tpu.dot_dimension_numbers<[1], [0], [0], [1], [0, 0, 1, 1], [], []>} : vector<1x64xf32>, vector<64x128xf32>, vector<1x128xf32> -> vector<1x128xf32>
    %c0_115 = arith.constant 0 : index
    %c0_116 = arith.constant 0 : index
    %147 = vector.load %arg7[%c0_115, %c0_116] : memref<1x1xf32, #tpu.memory_space<vmem>>, vector<1x1xf32>
    %148 = vector.broadcast %147 : vector<1x1xf32> to vector<1x128xf32>
    %149 = arith.addf %146, %148 : vector<1x128xf32>
    %c0_117 = arith.constant 0 : index
    %c0_118 = arith.constant 0 : index
    %150 = vector.load %arg8[%c0_117, %c0_118] : memref<1x128xf32, #tpu.memory_space<vmem>>, vector<1x128xf32>
    tpu.vector_store %arg8[%c0_117, %c0_118], %149 {strides = array<i32>} : memref<1x128xf32, #tpu.memory_space<vmem>>, vector<1x128xf32>,
    return
  }
  func.func @transform_0(%arg0: i32) -> (i32, i32, i32) {
    %c0_i32 = arith.constant 0 : i32
    %c0_i32_0 = arith.constant 0 : i32
    %c0_i32_1 = arith.constant 0 : i32
    return %c0_i32, %c0_i32_0, %arg0 : i32, i32, i32
  }
  func.func @transform_1(%arg0: i32) -> (i32, i32) {
    %c0_i32 = arith.constant 0 : i32
    %c0_i32_0 = arith.constant 0 : i32
    %c0_i32_1 = arith.constant 0 : i32
    return %c0_i32, %c0_i32_0 : i32, i32
  }
  func.func @transform_2(%arg0: i32) -> (i32, i32) {
    %c0_i32 = arith.constant 0 : i32
    %c0_i32_0 = arith.constant 0 : i32
    %c0_i32_1 = arith.constant 0 : i32
    return %c0_i32, %c0_i32_0 : i32, i32
  }
  func.func @transform_3(%arg0: i32) -> (i32, i32) {
    %c0_i32 = arith.constant 0 : i32
    %c0_i32_0 = arith.constant 0 : i32
    %c0_i32_1 = arith.constant 0 : i32
    return %c0_i32, %c0_i32_0 : i32, i32
  }
  func.func @transform_4(%arg0: i32) -> (i32, i32) {
    %c0_i32 = arith.constant 0 : i32
    %c0_i32_0 = arith.constant 0 : i32
    %c0_i32_1 = arith.constant 0 : i32
    return %c0_i32, %c0_i32_0 : i32, i32
  }
  func.func @transform_5(%arg0: i32) -> (i32, i32) {
    %c0_i32 = arith.constant 0 : i32
    %c0_i32_0 = arith.constant 0 : i32
    %c0_i32_1 = arith.constant 0 : i32
    return %c0_i32, %c0_i32_0 : i32, i32
  }
  func.func @transform_6(%arg0: i32) -> (i32, i32) {
    %c0_i32 = arith.constant 0 : i32
    %c0_i32_0 = arith.constant 0 : i32
    %c0_i32_1 = arith.constant 0 : i32
    return %c0_i32, %c0_i32_0 : i32, i32
  }
  func.func @transform_7(%arg0: i32) -> (i32, i32) {
    %c0_i32 = arith.constant 0 : i32
    %c0_i32_0 = arith.constant 0 : i32
    return %c0_i32, %arg0 : i32, i32
  }
}

</mosaic_0001>

<bundles_post_ra>
// kernel: tpu_custom_call.1
= control target key start
LH: loop header
LB: loop body
LE: loop exit
PB: predicated region body
PF: predicated region fallthrough
CT: control target
= control target key end

     0   :  { %s1674_s0 = inlined_call_operand.vmem [shape: bf16[8,4,128], index: 0, kind: input, shape index: {}]   ;;  %s1675_s1 = inlined_call_operand.vmem [shape: bf16[64,4], index: 1, kind: input, shape index: {}]   ;;  %s1676_s2 = inlined_call_operand.vmem [shape: f32[64,1], index: 2, kind: input, shape index: {}]   ;;  %s1677_s3 = inlined_call_operand.vmem [shape: bf16[64,64], index: 3, kind: input, shape index: {}]   ;;  %s1678_s4 = inlined_call_operand.vmem [shape: f32[64,1], index: 4, kind: input, shape index: {}]   ;;  %s1679_s5 = inlined_call_operand.vmem [shape: f32[1,64], index: 5, kind: input, shape index: {}]   ;;  %s1680_s6 = inlined_call_operand.<no memory space> [shape: f32[1,1], index: 6, kind: input, shape index: {}]   ;;  %s1681_s7 = inlined_call_operand.hbm [shape: f32[1,128], index: 7, kind: output, shape index: {}]  }
   0x1   :  { %v12_v0 = vstv %s1680_s6 }
   0x2   :  { %13 = vst [vmem:[#allocation2] sm:$0x1] %v12_v0 }
   0x3   :  { %vm120_vm0 = vcmask 1041408   ;;  %v1024_v1 = vld [vmem:[%s1674_s0 + $0x2] sm:$0x3]  ;;  %v45_v2 = vld [vmem:[%s1676_s2 + $0x30] sm:$0xff]  ;;  %v1127_v3 = vmov 0   ;;  %vm107_vm1 = vcmask 31744  }
   0x4   :  { %1098 = vset.pattern.permute.xlu0 %v1127_v3  ;;  %v302_v4 = vsel %vm120_vm0, %v1024_v1, 0  ;;  %v30_v5 = vld [vmem:[%s1674_s0] sm:$0x3]  ;;  %1099 = vset.pattern.permute.xlu1 %v1127_v3 }
   0x5   :  { %v1185_v6 = vld [vmem:[%s1675_s1] sm:$0xff]  ;;  %311 = vmatpush.bf16.msra.mxu2 %v302_v4  ;;  %79 = vperm.xlu0 %1098, %v45_v2   ;;  %v122_v8 = vsel %vm120_vm0, %v30_v5, 0 }
   0x6   :  { %v43_v7 = vld [vmem:[%s1676_s2 + $0x20] sm:$0xff]  ;;  %131 = vmatpush.bf16.msra.mxu0 %v122_v8 }
   0x7   :  { %69 = vperm.xlu1 %1099, %v43_v7  }
   0x8   :  { %14 = vsyncpa [#allocation4], 0  ;;  %1100 = vset.pattern.permute.xlu2 %v1127_v3  ;;  %1025 = vmatmul.msk.bf16.vlgmr.msra.gmra.mxu2 %vm107_vm1, %v1185_v6  ;;  %v46_v9 = vld [vmem:[%s1676_s2 + $0x38] sm:$0xff]  ;;  %v44_v10 = vld [vmem:[%s1676_s2 + $0x28] sm:$0xff]  ;;  %vm241_vm2 = vcmask 523264   ;;  %s1128_s14 = smov [#allocation3]  }
   0x9   :  { %1000 = vmatmul.msk.bf16.vlgmr.msra.gmra.mxu0 %vm107_vm1, %v1185_v6  ;;  %v39_v11 = vld [vmem:[%s1676_s2] sm:$0xff]  ;;  %v40_v12 = vld [vmem:[%s1676_s2 + $0x8] sm:$0xff]  ;;  %v41_v14 = vld [vmem:[%s1676_s2 + $0x10] sm:$0xff]  ;;  %s973_s15 = sshll.u32 %s1128_s14, 4  ;;  %s975_s18 = sshll.u32 %s1681_s7, 4  ;;  %s974_s15 = int_to_ptr.vmem [resolvable:$true] %s973_s15  ;;  %s976_s18 = int_to_ptr.hbm [resolvable:$true] %s975_s18 }
   0xa   :  { %v1210_v13 = vld [vmem:[%s1675_s1 + $0x8] sm:$0xff]  ;;  %v179_v15 = vld [vmem:[%s1678_s4 + $0x30] sm:$0xff]  ;;  %59 = vperm.xlu2 %1100, %v41_v14   ;;  %v1033_v16 = vld [vmem:[%s1674_s0 + $0x4] sm:$0x3] }
   0xb   :  { %v178_v17 = vld [vmem:[%s1678_s4 + $0x28] sm:$0xff]  ;;  %v393_v18 = vsel %vm120_vm0, %v1033_v16, 0  ;;  %v42_v19 = vld [vmem:[%s1676_s2 + $0x18] sm:$0xff]  ;;  %v175_v21 = vld [vmem:[%s1678_s4 + $0x10] sm:$0xff] }
   0xc   :  { %402 = vmatpush.bf16.msrb.mxu0 %v393_v18  ;;  %v176_v20 = vld [vmem:[%s1678_s4 + $0x18] sm:$0xff]  ;;  %v1241_v22 = vld [vmem:[%s1675_s1 + $0x10] sm:$0xff]  ;;  %v173_v24 = vld [vmem:[%s1678_s4] sm:$0xff] }
   0xd   :  { %84 = vperm.xlu0 %1098, %v46_v9   ;;  %v180_v23 = vld [vmem:[%s1678_s4 + $0x38] sm:$0xff]  ;;  %v937_v25 = vld [vmem:[#allocation2] sm:$0x1]  ;;  %v174_v28 = vld [vmem:[%s1678_s4 + $0x8] sm:$0xff] }
   0xe   :  { %v1256_v26 = vld [vmem:[%s1675_s1 + $0x18] sm:$0xff]  ;;  %v177_v27 = vld [vmem:[%s1678_s4 + $0x20] sm:$0xff]  ;;  %v1051_v29 = vld [vmem:[%s1674_s0 + $0x8] sm:$0x3] }
   0xf   :  { %74 = vperm.xlu1 %1099, %v44_v10   ;;  %v575_v30 = vsel %vm120_vm0, %v1051_v29, 0  ;;  %v1069_v39 = vld [vmem:[%s1674_s0 + $0xc] sm:$0x3] }
  0x10   :  { %584 = vmatpush.bf16.msra.mxu0 %v575_v30  ;;  %v757_v40 = vsel %vm120_vm0, %v1069_v39, 0 }
  0x12   :  { %64 = vperm.xlu2 %1100, %v42_v19  }
  0x15   :  { %49 = vperm.xlu0 %1098, %v39_v11  }
  0x17   :  { %54 = vperm.xlu1 %1099, %v40_v12  }
  0x18   :  { %1026 = vmatmul.msk.bf16.gmra.mxu2 %vm107_vm1, %v1210_v13 }
  0x19   :  { %1001 = vmatmul.msk.bf16.gmra.mxu0 %vm107_vm1, %v1210_v13 }
  0x1a   :  { %218 = vperm.xlu2 %1100, %v180_v23  }
  0x1d   :  { %213 = vperm.xlu0 %1098, %v179_v15  }
  0x1f   :  { %208 = vperm.xlu1 %1099, %v178_v17  }
  0x22   :  { %203 = vperm.xlu2 %1100, %v177_v27  }
  0x25   :  { %198 = vperm.xlu0 %1098, %v176_v20  }
  0x27   :  { %193 = vperm.xlu1 %1099, %v175_v21  }
  0x28   :  { %1027 = vmatmul.msk.bf16.gmra.mxu2 %vm107_vm1, %v1241_v22 }
  0x29   :  { %1002 = vmatmul.msk.bf16.gmra.mxu0 %vm107_vm1, %v1241_v22 }
  0x2a   :  { %188 = vperm.xlu2 %1100, %v174_v28  }
  0x2d   :  { %183 = vperm.xlu0 %1098, %v173_v24  }
  0x2f   :  { %940 = vperm.xlu1 %1099, %v937_v25  }
  0x38   :  { %1028 = vmatmul.msk.bf16.gmra.mxu2 %vm107_vm1, %v1256_v26 }
  0x39   :  { %1003 = vmatmul.msk.bf16.gmra.mxu0 %vm107_vm1, %v1256_v26 }
  0x49   :  { %1034 = vmatmul.msk.bf16.vlgmr.msrb.gmra.mxu0 %vm107_vm1, %v1185_v6 }
  0x4a   :  { %766 = vmatpush.bf16.msrb.mxu0 %v757_v40 }
  0x59   :  { %1035 = vmatmul.msk.bf16.gmra.mxu0 %vm107_vm1, %v1210_v13 }
  0x64   :  { %v1294_v47 = vpop.permute.xlu2 %59 }
  0x69   :  { %1036 = vmatmul.msk.bf16.gmra.mxu0 %vm107_vm1, %v1241_v22 }
  0x6c   :  { %v1305_v56 = vpop.permute.xlu2 %64 }
  0x77   :  { %v1292_v45 = vpop.permute.xlu0 %79 }
  0x79   :  { %1037 = vmatmul.msk.bf16.gmra.mxu0 %vm107_vm1, %v1256_v26  ;;  %v1290_v44 = vpop.permute.xlu1 %69 }
  0x7f   :  { %v1300_v51 = vpop.permute.xlu0 %84 }
  0x81   :  { %v1298_v49 = vpop.permute.xlu1 %74 }
  0x86   :  { %v133_v31 = vpop.f32.mrf.mxu0 }
  0x87   :  { %v1316_v8 = vpop.permute.xlu0 %49 }
  0x88   :  { %v134_v23 = vadd.f32 %v133_v31, %v1316_v8  ;;  %v1331_v31 = vld [vmem:[%s1677_s3] sm:$0xff] }
  0x89   :  { %1052 = vmatmul.msk.bf16.vlgmr.msra.gmra.mxu0 %vm107_vm1, %v1185_v6  ;;  %v1310_v1 = vpop.permute.xlu1 %54 }
  0x8b   :  { %v313_v32 = vpop.f32.mrf.mxu2 }
  0x8c   :  { %v314_v24 = vadd.f32 %v313_v32, %v1316_v8 }
  0x8e   :  { %v135_v33 = vpop.f32.mrf.mxu0 }
  0x8f   :  { %v136_v12 = vadd.f32 %v135_v33, %v1310_v1 }
  0x91   :  { %v154_v25 = vmax.f32 %v136_v12, 0.0 }
  0x93   :  { %v315_v34 = vpop.f32.mrf.mxu2 }
  0x94   :  { %v316_v28 = vadd.f32 %v315_v34, %v1310_v1 }
  0x96   :  { %v138_v35 = vpop.f32.mrf.mxu0  ;;  %v334_v39 = vmax.f32 %v316_v28, 0.0 }
  0x97   :  { %v139_v5 = vadd.f32 %v138_v35, %v1294_v47  ;;  %v153_v35 = vmax.f32 %v134_v23, 0.0 }
  0x99   :  { %1053 = vmatmul.msk.bf16.gmra.mxu0 %vm107_vm1, %v1210_v13  ;;  %v155_v21 = vmax.f32 %v139_v5, 0.0 }
  0x9b   :  { %v318_v36 = vpop.f32.mrf.mxu2 }
  0x9c   :  { %v319_v14 = vadd.f32 %v318_v36, %v1294_v47 }
  0x9e   :  { %v140_v37 = vpop.f32.mrf.mxu0  ;;  %v335_v29 = vmax.f32 %v319_v14, 0.0 }
  0x9f   :  { %v141_v61 = vadd.f32 %v140_v37, %v1305_v56  ;;  %v169_v37 = vpack.c.bf16 %v154_v25, %v153_v35 }
  0xa1   :  { %v156_v15 = vmax.f32 %v141_v61, 0.0 }
  0xa3   :  { %v320_v38 = vpop.f32.mrf.mxu2  ;;  %v170_v27 = vpack.c.bf16 %v156_v15, %v155_v21  ;;  %v1060_v21 = vld [vmem:[%s1674_s0 + $0xa] sm:$0x3] }
  0xa4   :  { %v321_v17 = vadd.f32 %v320_v38, %v1305_v56  ;;  %v333_v38 = vmax.f32 %v314_v24, 0.0  ;;  %v666_v24 = vsel %vm120_vm0, %v1060_v21, 0 }
  0xa6   :  { %v143_v41 = vpop.f32.mrf.mxu0  ;;  %v336_v30 = vmax.f32 %v321_v17, 0.0  ;;  %v341_v32 = vpack.c.bf16 %v334_v39, %v333_v38 }
  0xa7   :  { %v144_v57 = vadd.f32 %v143_v41, %v1290_v44 }
  0xa8   :  { %v342_v40 = vpack.c.bf16 %v336_v30, %v335_v29 }
  0xa9   :  { %1054 = vmatmul.msk.bf16.gmra.mxu0 %vm107_vm1, %v1241_v22  ;;  %v157_v7 = vmax.f32 %v144_v57, 0.0 }
  0xab   :  { %v323_v42 = vpop.f32.mrf.mxu2 }
  0xac   :  { %v324_v2 = vadd.f32 %v323_v42, %v1290_v44  ;;  %v1342_v42 = vld [vmem:[%s1677_s3 + $0x8] sm:$0xff] }
  0xae   :  { %v145_v43 = vpop.f32.mrf.mxu0  ;;  %v337_v18 = vmax.f32 %v324_v2, 0.0 }
  0xaf   :  { %v146_v54 = vadd.f32 %v145_v43, %v1298_v49  ;;  %v1042_v43 = vld [vmem:[%s1674_s0 + $0x6] sm:$0x3] }
  0xb1   :  { %v158_v62 = vmax.f32 %v146_v54, 0.0 }
  0xb3   :  { %v325_v46 = vpop.f32.mrf.mxu2  ;;  %v171_v16 = vpack.c.bf16 %v158_v62, %v157_v7 }
  0xb4   :  { %v326_v3 = vadd.f32 %v325_v46, %v1298_v49 }
  0xb6   :  { %v148_v48 = vpop.f32.mrf.mxu0  ;;  %v338_v19 = vmax.f32 %v326_v3, 0.0 }
  0xb7   :  { %v149_v52 = vadd.f32 %v148_v48, %v1292_v45  ;;  %v484_v48 = vsel %vm120_vm0, %v1042_v43, 0 }
  0xb8   :  { %v343_v33 = vpack.c.bf16 %v338_v19, %v337_v18 }
  0xb9   :  { %1055 = vmatmul.msk.bf16.gmra.mxu0 %vm107_vm1, %v1256_v26  ;;  %v159_v58 = vmax.f32 %v149_v52, 0.0  ;;  %v1357_v52 = vld [vmem:[%s1677_s3 + $0x10] sm:$0xff] }
  0xbb   :  { %v328_v50 = vpop.f32.mrf.mxu2 }
  0xbc   :  { %v329_v60 = vadd.f32 %v328_v50, %v1292_v45 }
  0xbe   :  { %v150_v53 = vpop.f32.mrf.mxu0  ;;  %v339_v9 = vmax.f32 %v329_v60, 0.0 }
  0xbf   :  { %v151_v55 = vadd.f32 %v150_v53, %v1300_v51 }
  0xc1   :  { %v160_v59 = vmax.f32 %v151_v55, 0.0 }
  0xc3   :  { %v330_v63 = vpop.f32.mrf.mxu2  ;;  %v172_v0 = vpack.c.bf16 %v160_v59, %v159_v58  ;;  %v1371_v59 = vld [vmem:[%s1677_s3 + $0x18] sm:$0xff] }
  0xc4   :  { %v331_v4 = vadd.f32 %v330_v63, %v1300_v51 }
  0xc5   :  { %258 = vmatpush.bf16.msra.mxu1 %v172_v0 }
  0xc6   :  { %v1318_v10 = vpop.f32.mrf.mxu0  ;;  %v340_v11 = vmax.f32 %v331_v4, 0.0 }
  0xc7   :  { %v405_v12 = vadd.f32 %v1318_v10, %v1316_v8 }
  0xc8   :  { %v344_v20 = vpack.c.bf16 %v340_v11, %v339_v9 }
  0xc9   :  { %259 = vmatpush.bf16.msra.mxu1 %v171_v16  ;;  %1070 = vmatmul.msk.bf16.vlgmr.msrb.gmra.mxu0 %vm107_vm1, %v1185_v6  ;;  %v424_v17 = vmax.f32 %v405_v12, 0.0 }
  0xca   :  { %349 = vmatpush.bf16.msra.mxu3 %v344_v20 }
  0xcd   :  { %260 = vmatpush.bf16.msra.mxu1 %v170_v27 }
  0xce   :  { %v406_v36 = vpop.f32.mrf.mxu0  ;;  %350 = vmatpush.bf16.msra.mxu3 %v343_v33 }
  0xcf   :  { %v407_v7 = vadd.f32 %v406_v36, %v1310_v1 }
  0xd1   :  { %261 = vmatpush.bf16.msra.mxu1 %v169_v37  ;;  %v425_v15 = vmax.f32 %v407_v7, 0.0 }
  0xd2   :  { %351 = vmatpush.bf16.msra.mxu3 %v342_v40 }
  0xd3   :  { %v432_v19 = vpack.c.bf16 %v425_v15, %v424_v17 }
  0xd4   :  { %1020 = vmatmul.msk.bf16.vlgmr.msra.gmra.mxu1 %vm241_vm2, %v1331_v31 }
  0xd5   :  { %493 = vmatpush.bf16.msrb.mxu1 %v484_v48 }
  0xd6   :  { %v409_v34 = vpop.f32.mrf.mxu0  ;;  %352 = vmatpush.bf16.msra.mxu3 %v341_v32 }
  0xd7   :  { %v410_v3 = vadd.f32 %v409_v34, %v1294_v47 }
  0xd9   :  { %1071 = vmatmul.msk.bf16.gmra.mxu0 %vm107_vm1, %v1210_v13  ;;  %1029 = vmatmul.msk.bf16.vlgmr.msra.gmra.mxu3 %vm241_vm2, %v1331_v31  ;;  %v426_v14 = vmax.f32 %v410_v3, 0.0 }
  0xda   :  { %675 = vmatpush.bf16.msra.mxu1 %v666_v24 }
  0xde   :  { %v411_v41 = vpop.f32.mrf.mxu0 }
  0xdf   :  { %v412_v63 = vadd.f32 %v411_v41, %v1305_v56  ;;  %v1409_v41 = vpop.permute.xlu0 %213 }
  0xe1   :  { %v427_v9 = vmax.f32 %v412_v63, 0.0 }
  0xe3   :  { %v433_v16 = vpack.c.bf16 %v427_v9, %v426_v14  ;;  %v1429_v14 = vpop.permute.xlu1 %208 }
  0xe4   :  { %1021 = vmatmul.msk.bf16.gmra.mxu1 %vm241_vm2, %v1342_v42 }
  0xe6   :  { %v414_v46 = vpop.f32.mrf.mxu0 }
  0xe7   :  { %v415_v60 = vadd.f32 %v414_v46, %v1290_v44 }
  0xe9   :  { %1072 = vmatmul.msk.bf16.gmra.mxu0 %vm107_vm1, %v1241_v22  ;;  %1030 = vmatmul.msk.bf16.gmra.mxu3 %vm241_vm2, %v1342_v42  ;;  %v428_v4 = vmax.f32 %v415_v60, 0.0 }
  0xee   :  { %v416_v50 = vpop.f32.mrf.mxu0 }
  0xef   :  { %v417_v57 = vadd.f32 %v416_v50, %v1298_v49 }
  0xf1   :  { %v429_v0 = vmax.f32 %v417_v57, 0.0 }
  0xf3   :  { %v434_v11 = vpack.c.bf16 %v429_v0, %v428_v4 }
  0xf4   :  { %1022 = vmatmul.msk.bf16.gmra.mxu1 %vm241_vm2, %v1357_v52 }
  0xf6   :  { %v419_v53 = vpop.f32.mrf.mxu0 }
  0xf7   :  { %v420_v54 = vadd.f32 %v419_v53, %v1292_v45 }
  0xf9   :  { %1073 = vmatmul.msk.bf16.gmra.mxu0 %vm107_vm1, %v1256_v26  ;;  %1031 = vmatmul.msk.bf16.gmra.mxu3 %vm241_vm2, %v1357_v52  ;;  %v430_v61 = vmax.f32 %v420_v54, 0.0 }
  0xfe   :  { %v421_v55 = vpop.f32.mrf.mxu0 }
  0xff   :  { %v422_v58 = vadd.f32 %v421_v55, %v1300_v51 }
 0x101   :  { %v431_v62 = vmax.f32 %v422_v58, 0.0 }
 0x103   :  { %v435_v2 = vpack.c.bf16 %v431_v62, %v430_v61  ;;  %v1417_v62 = vpop.permute.xlu0 %198 }
 0x104   :  { %1023 = vmatmul.msk.bf16.gmra.mxu1 %vm241_vm2, %v1371_v59 }
 0x105   :  { %440 = vmatpush.bf16.msrb.mxu2 %v435_v2 }
 0x106   :  { %v586_v5 = vpop.f32.mrf.mxu0 }
 0x107   :  { %v587_v53 = vadd.f32 %v586_v5, %v1316_v8 }
 0x109   :  { %441 = vmatpush.bf16.msrb.mxu2 %v434_v11  ;;  %1032 = vmatmul.msk.bf16.gmra.mxu3 %vm241_vm2, %v1371_v59  ;;  %v606_v58 = vmax.f32 %v587_v53, 0.0 }
 0x10b   :  { %v1425_v3 = vpop.permute.xlu0 %183 }
 0x10d   :  { %442 = vmatpush.bf16.msrb.mxu2 %v433_v16 }
 0x10e   :  { %v588_v18 = vpop.f32.mrf.mxu0 }
 0x10f   :  { %v589_v46 = vadd.f32 %v588_v18, %v1310_v1 }
 0x111   :  { %443 = vmatpush.bf16.msrb.mxu2 %v432_v19  ;;  %v607_v55 = vmax.f32 %v589_v46, 0.0 }
 0x113   :  { %v614_v61 = vpack.c.bf16 %v607_v55, %v606_v58 }
 0x114   :  { %1038 = vmatmul.msk.bf16.vlgmr.msrb.gmra.mxu2 %vm241_vm2, %v1331_v31  ;;  %1043 = vmatmul.msk.bf16.vlgmr.msrb.gmra.mxu1 %vm107_vm1, %v1185_v6 }
 0x116   :  { %v591_v20 = vpop.f32.mrf.mxu0 }
 0x117   :  { %v592_v32 = vadd.f32 %v591_v20, %v1294_v47  ;;  %v1078_v20 = vld [vmem:[%s1674_s0 + $0xe] sm:$0x3] }
 0x118   :  { %v848_v21 = vsel %vm120_vm0, %v1078_v20, 0 }
 0x119   :  { %v608_v54 = vmax.f32 %v592_v32, 0.0  ;;  %857 = vmatpush.bf16.msrb.mxu1 %v848_v21 }
 0x11e   :  { %v593_v10 = vpop.f32.mrf.mxu0 }
 0x11f   :  { %v594_v38 = vadd.f32 %v593_v10, %v1305_v56  ;;  %v1444_v10 = vpop.permute.xlu1 %193 }
 0x121   :  { %v609_v48 = vmax.f32 %v594_v38, 0.0 }
 0x123   :  { %v615_v57 = vpack.c.bf16 %v609_v48, %v608_v54 }
 0x124   :  { %1039 = vmatmul.msk.bf16.gmra.mxu2 %vm241_vm2, %v1342_v42  ;;  %1044 = vmatmul.msk.bf16.gmra.mxu1 %vm107_vm1, %v1210_v13 }
 0x126   :  { %v596_v23 = vpop.f32.mrf.mxu0 }
 0x127   :  { %v597_v35 = vadd.f32 %v596_v23, %v1290_v44 }
 0x129   :  { %v610_v34 = vmax.f32 %v597_v35, 0.0 }
 0x12e   :  { %v598_v25 = vpop.f32.mrf.mxu0 }
 0x12f   :  { %v599_v30 = vadd.f32 %v598_v25, %v1298_v49 }
 0x131   :  { %v611_v39 = vmax.f32 %v599_v30, 0.0  ;;  %v1449_v30 = vpop.permute.xlu2 %218 }
 0x133   :  { %v616_v50 = vpack.c.bf16 %v611_v39, %v610_v34 }
 0x134   :  { %1040 = vmatmul.msk.bf16.gmra.mxu2 %vm241_vm2, %v1357_v52  ;;  %1045 = vmatmul.msk.bf16.gmra.mxu1 %vm107_vm1, %v1241_v22 }
 0x136   :  { %v601_v27 = vpop.f32.mrf.mxu0 }
 0x137   :  { %v602_v28 = vadd.f32 %v601_v27, %v1292_v45 }
 0x139   :  { %v612_v36 = vmax.f32 %v602_v28, 0.0  ;;  %v1461_v39 = vpop.permute.xlu2 %203 }
 0x13e   :  { %v603_v29 = vpop.f32.mrf.mxu0 }
 0x13f   :  { %v604_v33 = vadd.f32 %v603_v29, %v1300_v51 }
 0x141   :  { %v613_v37 = vmax.f32 %v604_v33, 0.0 }
 0x143   :  { %v617_v40 = vpack.c.bf16 %v613_v37, %v612_v36 }
 0x144   :  { %1041 = vmatmul.msk.bf16.gmra.mxu2 %vm241_vm2, %v1371_v59  ;;  %1046 = vmatmul.msk.bf16.gmra.mxu1 %vm107_vm1, %v1256_v26 }
 0x145   :  { %622 = vmatpush.bf16.msra.mxu2 %v617_v40 }
 0x146   :  { %v1411_v43 = vpop.f32.mrf.mxu0 }
 0x149   :  { %623 = vmatpush.bf16.msra.mxu2 %v616_v50 }
 0x14d   :  { %624 = vmatpush.bf16.msra.mxu2 %v615_v57 }
 0x14e   :  { %v1415_v60 = vpop.f32.mrf.mxu0 }
 0x14f   :  { %v771_v20 = vadd.f32 %v1415_v60, %v1310_v1 }
 0x151   :  { %v263_v63 = vpop.f32.mrf.mxu1  ;;  %625 = vmatpush.bf16.msra.mxu2 %v614_v61 }
 0x152   :  { %v264_v4 = vadd.f32 %v263_v63, %v1425_v3 }
 0x154   :  { %1056 = vmatmul.msk.bf16.vlgmr.msra.gmra.mxu2 %vm241_vm2, %v1331_v31  ;;  %1061 = vmatmul.msk.bf16.vlgmr.msra.gmra.mxu1 %vm107_vm1, %v1185_v6  ;;  %v283_v11 = vmax.f32 %v264_v4, 0.0 }
 0x156   :  { %v773_v0 = vpop.f32.mrf.mxu0 }
 0x159   :  { %v1423_v2 = vpop.f32.mrf.mxu1 }
 0x15c   :  { %v354_v5 = vpop.f32.mrf.mxu3 }
 0x15d   :  { %v355_v7 = vadd.f32 %v354_v5, %v1425_v3 }
 0x15e   :  { %v775_v9 = vpop.f32.mrf.mxu0 }
 0x15f   :  { %v374_v12 = vmax.f32 %v355_v7, 0.0  ;;  %v776_v5 = vadd.f32 %v775_v9, %v1305_v56  ;;  %v769_v9 = vadd.f32 %v1411_v43, %v1316_v8 }
 0x161   :  { %v1431_v15 = vadd.f32 %v374_v12, %v283_v11  ;;  %v268_v16 = vpop.f32.mrf.mxu1  ;;  %v791_v21 = vmax.f32 %v776_v5, 0.0 }
 0x162   :  { %v269_v23 = vadd.f32 %v268_v16, %v1444_v10  ;;  %v774_v16 = vadd.f32 %v773_v0, %v1294_v47  ;;  %v788_v0 = vmax.f32 %v769_v9, 0.0 }
 0x164   :  { %1057 = vmatmul.msk.bf16.gmra.mxu2 %vm241_vm2, %v1342_v42  ;;  %1062 = vmatmul.msk.bf16.gmra.mxu1 %vm107_vm1, %v1210_v13  ;;  %v1437_v17 = vpop.f32.mrf.mxu3  ;;  %v285_v28 = vmax.f32 %v269_v23, 0.0 }
 0x166   :  { %v778_v18 = vpop.f32.mrf.mxu0 }
 0x167   :  { %v779_v57 = vadd.f32 %v778_v18, %v1290_v44 }
 0x169   :  { %v1439_v19 = vpop.f32.mrf.mxu1  ;;  %v792_v18 = vmax.f32 %v779_v57, 0.0 }
 0x16c   :  { %v359_v24 = vpop.f32.mrf.mxu3 }
 0x16d   :  { %v360_v25 = vadd.f32 %v359_v24, %v1444_v10  ;;  %v790_v24 = vmax.f32 %v774_v16, 0.0 }
 0x16e   :  { %v780_v27 = vpop.f32.mrf.mxu0 }
 0x16f   :  { %v376_v29 = vmax.f32 %v360_v25, 0.0  ;;  %v781_v50 = vadd.f32 %v780_v27, %v1298_v49  ;;  %v789_v27 = vmax.f32 %v771_v20, 0.0 }
 0x171   :  { %v1451_v33 = vadd.f32 %v376_v29, %v285_v28  ;;  %v273_v35 = vpop.f32.mrf.mxu1  ;;  %v793_v7 = vmax.f32 %v781_v50, 0.0  ;;  %v797_v28 = vpack.c.bf16 %v791_v21, %v790_v24  ;;  %v1496_v50 = vpop.permute.xlu2 %188 }
 0x172   :  { %v274_v40 = vadd.f32 %v273_v35, %v1461_v39  ;;  %v266_v57 = vadd.f32 %v1423_v2, %v1496_v50 }
 0x173   :  { %v798_v23 = vpack.c.bf16 %v793_v7, %v792_v18 }
 0x174   :  { %1058 = vmatmul.msk.bf16.gmra.mxu2 %vm241_vm2, %v1357_v52  ;;  %1063 = vmatmul.msk.bf16.gmra.mxu1 %vm107_vm1, %v1241_v22  ;;  %v1457_v36 = vpop.f32.mrf.mxu3  ;;  %v287_v53 = vmax.f32 %v274_v40, 0.0  ;;  %v796_v40 = vpack.c.bf16 %v789_v27, %v788_v0 }
 0x175   :  { %v362_v20 = vadd.f32 %v1457_v36, %v1417_v62 }
 0x176   :  { %v783_v37 = vpop.f32.mrf.mxu0 }
 0x177   :  { %v784_v34 = vadd.f32 %v783_v37, %v1292_v45  ;;  %v377_v24 = vmax.f32 %v362_v20, 0.0 }
 0x179   :  { %v1459_v38 = vpop.f32.mrf.mxu1  ;;  %v794_v58 = vmax.f32 %v784_v34, 0.0 }
 0x17c   :  { %v364_v32 = vpop.f32.mrf.mxu3 }
 0x17d   :  { %v365_v46 = vadd.f32 %v364_v32, %v1461_v39 }
 0x17e   :  { %v785_v48 = vpop.f32.mrf.mxu0 }
 0x17f   :  { %v378_v54 = vmax.f32 %v365_v46, 0.0  ;;  %v786_v55 = vadd.f32 %v785_v48, %v1300_v51 }
 0x181   :  { %v1469_v61 = vadd.f32 %v378_v54, %v287_v53  ;;  %v795_v63 = vmax.f32 %v786_v55, 0.0  ;;  %v278_v4 = vpop.f32.mrf.mxu1  ;;  %v357_v54 = vadd.f32 %v1437_v17, %v1496_v50 }
 0x182   :  { %v279_v29 = vadd.f32 %v278_v4, %v1409_v41 }
 0x183   :  { %v799_v11 = vpack.c.bf16 %v795_v63, %v794_v58  ;;  %v375_v63 = vmax.f32 %v357_v54, 0.0 }
 0x184   :  { %1059 = vmatmul.msk.bf16.gmra.mxu2 %vm241_vm2, %v1371_v59  ;;  %1064 = vmatmul.msk.bf16.gmra.mxu1 %vm107_vm1, %v1256_v26  ;;  %v1476_v12 = vpop.f32.mrf.mxu3  ;;  %v289_v60 = vmax.f32 %v279_v29, 0.0 }
 0x185   :  { %804 = vmatpush.bf16.msrb.mxu2 %v799_v11 }
 0x189   :  { %v1483_v25 = vpop.f32.mrf.mxu1  ;;  %805 = vmatpush.bf16.msrb.mxu2 %v798_v23  ;;  %v271_v23 = vadd.f32 %v1439_v19, %v1417_v62 }
 0x18c   :  { %v369_v35 = vpop.f32.mrf.mxu3 }
 0x18d   :  { %v370_v37 = vadd.f32 %v369_v35, %v1409_v41  ;;  %806 = vmatpush.bf16.msrb.mxu2 %v797_v28  ;;  %v286_v28 = vmax.f32 %v271_v23, 0.0 }
 0x18f   :  { %v380_v32 = vmax.f32 %v370_v37, 0.0  ;;  %v385_v35 = vadd.f32 %v377_v24, %v286_v28 }
 0x191   :  { %v1487_v34 = vadd.f32 %v380_v32, %v289_v60  ;;  %v1489_v46 = vpop.f32.mrf.mxu1  ;;  %807 = vmatpush.bf16.msrb.mxu2 %v796_v40  ;;  %v367_v40 = vadd.f32 %v1476_v12, %v1429_v14  ;;  %v276_v32 = vadd.f32 %v1459_v38, %v1429_v14 }
 0x194   :  { %1074 = vmatmul.msk.bf16.vlgmr.msrb.gmra.mxu2 %vm241_vm2, %v1331_v31  ;;  %1079 = vmatmul.msk.bf16.vlgmr.msrb.gmra.mxu1 %vm107_vm1, %v1185_v6  ;;  %v284_v6 = vmax.f32 %v266_v57, 0.0  ;;  %v371_v38 = vpop.f32.mrf.mxu3 }
 0x196   :  { %v383_v11 = vadd.f32 %v375_v63, %v284_v6 }
 0x197   :  { %v445_v43 = vpop.f32.mrf.mxu2 }
 0x198   :  { %v446_v48 = vadd.f32 %v445_v43, %v1425_v3 }
 0x199   :  { %v1498_v53 = vpop.f32.mrf.mxu1 }
 0x19a   :  { %v465_v55 = vmax.f32 %v446_v48, 0.0  ;;  %v379_v48 = vmax.f32 %v367_v40, 0.0 }
 0x19c   :  { %v1505_v58 = vadd.f32 %v465_v55, %v1431_v15  ;;  %v288_v55 = vmax.f32 %v276_v32, 0.0 }
 0x19e   :  { %v387_v63 = vadd.f32 %v379_v48, %v288_v55 }
 0x19f   :  { %v447_v4 = vpop.f32.mrf.mxu2 }
 0x1a0   :  { %v448_v5 = vadd.f32 %v447_v4, %v1496_v50 }
 0x1a1   :  { %v500_v7 = vpop.f32.mrf.mxu1 }
 0x1a2   :  { %v466_v16 = vmax.f32 %v448_v5, 0.0 }
 0x1a4   :  { %v1508_v18 = vadd.f32 %v466_v16, %v383_v11  ;;  %1075 = vmatmul.msk.bf16.gmra.mxu2 %vm241_vm2, %v1342_v42  ;;  %1080 = vmatmul.msk.bf16.gmra.mxu1 %vm107_vm1, %v1210_v13  ;;  %v372_v11 = vadd.f32 %v371_v38, %v1449_v30 }
 0x1a6   :  { %v381_v28 = vmax.f32 %v372_v11, 0.0 }
 0x1a7   :  { %v450_v2 = vpop.f32.mrf.mxu2 }
 0x1a8   :  { %v451_v15 = vadd.f32 %v450_v2, %v1444_v10 }
 0x1a9   :  { %v502_v17 = vpop.f32.mrf.mxu1 }
 0x1aa   :  { %v467_v21 = vmax.f32 %v451_v15, 0.0 }
 0x1ac   :  { %v1520_v9 = vadd.f32 %v467_v21, %v1451_v33  ;;  %v281_v21 = vadd.f32 %v1483_v25, %v1449_v30 }
 0x1af   :  { %v452_v27 = vpop.f32.mrf.mxu2 }
 0x1b0   :  { %v453_v29 = vadd.f32 %v452_v27, %v1417_v62 }
 0x1b1   :  { %v505_v13 = vpop.f32.mrf.mxu1 }
 0x1b2   :  { %v468_v0 = vmax.f32 %v453_v29, 0.0  ;;  %v506_v23 = vadd.f32 %v505_v13, %v1290_v44  ;;  %v503_v29 = vadd.f32 %v502_v17, %v1305_v56  ;;  %v496_v17 = vadd.f32 %v1489_v46, %v1316_v8 }
 0x1b4   :  { %v1523_v37 = vadd.f32 %v468_v0, %v385_v35  ;;  %1076 = vmatmul.msk.bf16.gmra.mxu2 %vm241_vm2, %v1357_v52  ;;  %1081 = vmatmul.msk.bf16.gmra.mxu1 %vm107_vm1, %v1241_v22  ;;  %v519_v40 = vmax.f32 %v506_v23, 0.0  ;;  %v518_v32 = vmax.f32 %v503_v29, 0.0 }
 0x1b7   :  { %v455_v19 = vpop.f32.mrf.mxu2 }
 0x1b8   :  { %v456_v33 = vadd.f32 %v455_v19, %v1461_v39  ;;  %v290_v19 = vmax.f32 %v281_v21, 0.0 }
 0x1b9   :  { %v507_v36 = vpop.f32.mrf.mxu1 }
 0x1ba   :  { %v469_v60 = vmax.f32 %v456_v33, 0.0  ;;  %v508_v2 = vadd.f32 %v507_v36, %v1298_v49  ;;  %v501_v36 = vadd.f32 %v500_v7, %v1294_v47  ;;  %v389_v25 = vadd.f32 %v381_v28, %v290_v19 }
 0x1bc   :  { %v1535_v43 = vadd.f32 %v469_v60, %v1469_v61  ;;  %v520_v35 = vmax.f32 %v508_v2, 0.0  ;;  %v517_v55 = vmax.f32 %v501_v36, 0.0 }
 0x1bf   :  { %v457_v54 = vpop.f32.mrf.mxu2 }
 0x1c0   :  { %v458_v57 = vadd.f32 %v457_v54, %v1429_v14  ;;  %v525_v54 = vpack.c.bf16 %v520_v35, %v519_v40 }
 0x1c1   :  { %v510_v22 = vpop.f32.mrf.mxu1 }
 0x1c2   :  { %v470_v4 = vmax.f32 %v458_v57, 0.0  ;;  %v511_v61 = vadd.f32 %v510_v22, %v1292_v45  ;;  %v524_v22 = vpack.c.bf16 %v518_v32, %v517_v55 }
 0x1c4   :  { %v1538_v6 = vadd.f32 %v470_v4, %v387_v63  ;;  %1077 = vmatmul.msk.bf16.gmra.mxu2 %vm241_vm2, %v1371_v59  ;;  %1082 = vmatmul.msk.bf16.gmra.mxu1 %vm107_vm1, %v1256_v26  ;;  %v521_v26 = vmax.f32 %v511_v61, 0.0  ;;  %v515_v63 = vmax.f32 %v496_v17, 0.0 }
 0x1c7   :  { %v460_v12 = vpop.f32.mrf.mxu2 }
 0x1c8   :  { %v461_v5 = vadd.f32 %v460_v12, %v1409_v41 }
 0x1c9   :  { %v512_v16 = vpop.f32.mrf.mxu1 }
 0x1ca   :  { %v471_v15 = vmax.f32 %v461_v5, 0.0  ;;  %v513_v20 = vadd.f32 %v512_v16, %v1300_v51 }
 0x1cc   :  { %v1553_v24 = vadd.f32 %v471_v15, %v1487_v34  ;;  %v522_v27 = vmax.f32 %v513_v20, 0.0  ;;  %v498_v34 = vadd.f32 %v1498_v53, %v1310_v1 }
 0x1ce   :  { %v526_v0 = vpack.c.bf16 %v522_v27, %v521_v26  ;;  %v516_v7 = vmax.f32 %v498_v34, 0.0 }
 0x1cf   :  { %v462_v33 = vpop.f32.mrf.mxu2 }
 0x1d0   :  { %v463_v60 = vadd.f32 %v462_v33, %v1449_v30  ;;  %531 = vmatpush.bf16.msrb.mxu3 %v526_v0  ;;  %v523_v38 = vpack.c.bf16 %v516_v7, %v515_v63 }
 0x1d1   :  { %v677_v13 = vpop.f32.mrf.mxu1 }
 0x1d2   :  { %v472_v48 = vmax.f32 %v463_v60, 0.0  ;;  %v678_v40 = vadd.f32 %v677_v13, %v1316_v8 }
 0x1d4   :  { %v1562_v57 = vadd.f32 %v472_v48, %v389_v25  ;;  %532 = vmatpush.bf16.msrb.mxu3 %v525_v54  ;;  %v697_v32 = vmax.f32 %v678_v40, 0.0 }
 0x1d8   :  { %533 = vmatpush.bf16.msrb.mxu3 %v524_v22 }
 0x1d9   :  { %v679_v4 = vpop.f32.mrf.mxu1 }
 0x1da   :  { %v680_v19 = vadd.f32 %v679_v4, %v1310_v1 }
 0x1dc   :  { %534 = vmatpush.bf16.msrb.mxu3 %v523_v38  ;;  %v698_v25 = vmax.f32 %v680_v19, 0.0 }
 0x1de   :  { %v705_v54 = vpack.c.bf16 %v698_v25, %v697_v32 }
 0x1df   :  { %1047 = vmatmul.msk.bf16.vlgmr.msrb.gmra.mxu3 %vm241_vm2, %v1331_v31 }
 0x1e1   :  { %v682_v53 = vpop.f32.mrf.mxu1 }
 0x1e2   :  { %v683_v29 = vadd.f32 %v682_v53, %v1294_v47 }
 0x1e4   :  { %v699_v60 = vmax.f32 %v683_v29, 0.0 }
 0x1e9   :  { %v684_v12 = vpop.f32.mrf.mxu1 }
 0x1ea   :  { %v685_v26 = vadd.f32 %v684_v12, %v1305_v56 }
 0x1ec   :  { %v700_v33 = vmax.f32 %v685_v26, 0.0 }
 0x1ee   :  { %v706_v34 = vpack.c.bf16 %v700_v33, %v699_v60 }
 0x1ef   :  { %1048 = vmatmul.msk.bf16.gmra.mxu3 %vm241_vm2, %v1342_v42 }
 0x1f1   :  { %v687_v46 = vpop.f32.mrf.mxu1 }
 0x1f2   :  { %v688_v20 = vadd.f32 %v687_v46, %v1290_v44 }
 0x1f4   :  { %v701_v35 = vmax.f32 %v688_v20, 0.0 }
 0x1f9   :  { %v689_v61 = vpop.f32.mrf.mxu1 }
 0x1fa   :  { %v690_v2 = vadd.f32 %v689_v61, %v1298_v49 }
 0x1fc   :  { %v702_v27 = vmax.f32 %v690_v2, 0.0  ;;  %v627_v2 = vpop.f32.mrf.mxu2 }
 0x1fd   :  { %v628_v29 = vadd.f32 %v627_v2, %v1425_v3 }
 0x1fe   :  { %v707_v36 = vpack.c.bf16 %v702_v27, %v701_v35 }
 0x1ff   :  { %1049 = vmatmul.msk.bf16.gmra.mxu3 %vm241_vm2, %v1357_v52 }
 0x201   :  { %v692_v5 = vpop.f32.mrf.mxu1 }
 0x202   :  { %v693_v11 = vadd.f32 %v692_v5, %v1292_v45 }
 0x204   :  { %v703_v21 = vmax.f32 %v693_v11, 0.0  ;;  %v629_v27 = vpop.f32.mrf.mxu2 }
 0x205   :  { %v630_v40 = vadd.f32 %v629_v27, %v1496_v50 }
 0x207   :  { %v648_v32 = vmax.f32 %v630_v40, 0.0 }
 0x209   :  { %v694_v16 = vpop.f32.mrf.mxu1 }
 0x20a   :  { %v695_v15 = vadd.f32 %v694_v16, %v1300_v51 }
 0x20c   :  { %v704_v23 = vmax.f32 %v695_v15, 0.0  ;;  %v632_v35 = vpop.f32.mrf.mxu2 }
 0x20e   :  { %v708_v28 = vpack.c.bf16 %v704_v23, %v703_v21 }
 0x20f   :  { %1050 = vmatmul.msk.bf16.gmra.mxu3 %vm241_vm2, %v1371_v59 }
 0x210   :  { %713 = vmatpush.bf16.msra.mxu3 %v708_v28 }
 0x211   :  { %v859_v0 = vpop.f32.mrf.mxu1 }
 0x214   :  { %714 = vmatpush.bf16.msra.mxu3 %v707_v36 }
 0x218   :  { %715 = vmatpush.bf16.msra.mxu3 %v706_v34  ;;  %v634_v34 = vpop.f32.mrf.mxu2 }
 0x219   :  { %v861_v48 = vpop.f32.mrf.mxu1 }
 0x21c   :  { %716 = vmatpush.bf16.msra.mxu3 %v705_v54 }
 0x21f   :  { %1065 = vmatmul.msk.bf16.vlgmr.msra.gmra.mxu3 %vm241_vm2, %v1331_v31 }
 0x221   :  { %v864_v17 = vpop.f32.mrf.mxu1 }
 0x222   :  { %v865_v15 = vadd.f32 %v864_v17, %v1294_v47  ;;  %v633_v17 = vadd.f32 %v632_v35, %v1444_v10 }
 0x224   :  { %v881_v21 = vmax.f32 %v865_v15, 0.0 }
 0x229   :  { %v866_v55 = vpop.f32.mrf.mxu1 }
 0x22a   :  { %v867_v5 = vadd.f32 %v866_v55, %v1305_v56 }
 0x22c   :  { %v882_v20 = vmax.f32 %v867_v5, 0.0 }
 0x22e   :  { %v888_v56 = vpack.c.bf16 %v882_v20, %v881_v21 }
 0x22f   :  { %1066 = vmatmul.msk.bf16.gmra.mxu3 %vm241_vm2, %v1342_v42 }
 0x231   :  { %v869_v7 = vpop.f32.mrf.mxu1 }
 0x232   :  { %v870_v12 = vadd.f32 %v869_v7, %v1290_v44  ;;  %v860_v44 = vadd.f32 %v859_v0, %v1316_v8  ;;  %v647_v8 = vmax.f32 %v628_v29, 0.0  ;;  %v649_v7 = vmax.f32 %v633_v17, 0.0 }
 0x234   :  { %v879_v26 = vmax.f32 %v860_v44, 0.0 }
 0x239   :  { %v871_v22 = vpop.f32.mrf.mxu1 }
 0x23a   :  { %v872_v38 = vadd.f32 %v871_v22, %v1298_v49  ;;  %v862_v49 = vadd.f32 %v861_v48, %v1310_v1 }
 0x23c   :  { %v884_v11 = vmax.f32 %v872_v38, 0.0  ;;  %v880_v23 = vmax.f32 %v862_v49, 0.0  ;;  %v635_v38 = vadd.f32 %v634_v34, %v1417_v62 }
 0x23e   :  { %v887_v28 = vpack.c.bf16 %v880_v23, %v879_v26 }
 0x23f   :  { %1067 = vmatmul.msk.bf16.gmra.mxu3 %vm241_vm2, %v1357_v52 }
 0x241   :  { %v874_v13 = vpop.f32.mrf.mxu1 }
 0x242   :  { %v875_v63 = vadd.f32 %v874_v13, %v1292_v45  ;;  %v883_v45 = vmax.f32 %v870_v12, 0.0  ;;  %v637_v13 = vpop.f32.mrf.mxu2  ;;  %v650_v12 = vmax.f32 %v635_v38, 0.0 }
 0x244   :  { %v885_v46 = vmax.f32 %v875_v63, 0.0 }
 0x249   :  { %v876_v4 = vpop.f32.mrf.mxu1 }
 0x24a   :  { %v877_v53 = vadd.f32 %v876_v4, %v1300_v51  ;;  %v889_v51 = vpack.c.bf16 %v884_v11, %v883_v45  ;;  %v638_v11 = vadd.f32 %v637_v13, %v1461_v39 }
 0x24c   :  { %v886_v61 = vmax.f32 %v877_v53, 0.0  ;;  %v651_v2 = vmax.f32 %v638_v11, 0.0 }
 0x24e   :  { %v890_v16 = vpack.c.bf16 %v886_v61, %v885_v46  ;;  %v639_v61 = vpop.f32.mrf.mxu2 }
 0x24f   :  { %1068 = vmatmul.msk.bf16.gmra.mxu3 %vm241_vm2, %v1371_v59  ;;  %v640_v20 = vadd.f32 %v639_v61, %v1429_v14 }
 0x250   :  { %895 = vmatpush.bf16.msrb.mxu3 %v890_v16 }
 0x254   :  { %896 = vmatpush.bf16.msrb.mxu3 %v889_v51 }
 0x256   :  { %v642_v51 = vpop.f32.mrf.mxu2 }
 0x257   :  { %v643_v26 = vadd.f32 %v642_v51, %v1409_v41 }
 0x258   :  { %897 = vmatpush.bf16.msrb.mxu3 %v888_v56 }
 0x25c   :  { %898 = vmatpush.bf16.msrb.mxu3 %v887_v28 }
 0x25e   :  { %v644_v28 = vpop.f32.mrf.mxu2 }
 0x25f   :  { %1083 = vmatmul.msk.bf16.vlgmr.msrb.gmra.mxu3 %vm241_vm2, %v1331_v31 }
 0x262   :  { %v536_v47 = vpop.f32.mrf.mxu3 }
 0x263   :  { %v537_v1 = vadd.f32 %v536_v47, %v1425_v3  ;;  %v653_v47 = vmax.f32 %v643_v26, 0.0 }
 0x265   :  { %v556_v19 = vmax.f32 %v537_v1, 0.0 }
 0x267   :  { %v564_v0 = vadd.f32 %v556_v19, %v1505_v58 }
 0x269   :  { %v655_v33 = vadd.f32 %v647_v8, %v564_v0  ;;  %v809_v0 = vpop.f32.mrf.mxu2 }
 0x26a   :  { %v538_v36 = vpop.f32.mrf.mxu3 }
 0x26b   :  { %v539_v60 = vadd.f32 %v538_v36, %v1496_v50  ;;  %v810_v36 = vadd.f32 %v809_v0, %v1425_v3 }
 0x26d   :  { %v557_v25 = vmax.f32 %v539_v60, 0.0 }
 0x26f   :  { %v565_v31 = vadd.f32 %v557_v25, %v1508_v18  ;;  %1084 = vmatmul.msk.bf16.gmra.mxu3 %vm241_vm2, %v1342_v42  ;;  %v829_v25 = vmax.f32 %v810_v36, 0.0 }
 0x271   :  { %v656_v48 = vadd.f32 %v648_v32, %v565_v31 }
 0x272   :  { %v541_v54 = vpop.f32.mrf.mxu3 }
 0x273   :  { %v542_v58 = vadd.f32 %v541_v54, %v1444_v10 }
 0x275   :  { %v558_v55 = vmax.f32 %v542_v58, 0.0 }
 0x277   :  { %v566_v22 = vadd.f32 %v558_v55, %v1520_v9 }
 0x279   :  { %v657_v63 = vadd.f32 %v649_v7, %v566_v22 }
 0x27a   :  { %v543_v4 = vpop.f32.mrf.mxu3 }
 0x27b   :  { %v544_v18 = vadd.f32 %v543_v4, %v1417_v62 }
 0x27d   :  { %v559_v53 = vmax.f32 %v544_v18, 0.0 }
 0x27f   :  { %v567_v42 = vadd.f32 %v559_v53, %v1523_v37  ;;  %1085 = vmatmul.msk.bf16.gmra.mxu3 %vm241_vm2, %v1357_v52  ;;  %v652_v52 = vmax.f32 %v640_v20, 0.0 }
 0x281   :  { %v658_v46 = vadd.f32 %v650_v12, %v567_v42 }
 0x282   :  { %v546_v5 = vpop.f32.mrf.mxu3 }
 0x283   :  { %v547_v9 = vadd.f32 %v546_v5, %v1461_v39 }
 0x285   :  { %v560_v16 = vmax.f32 %v547_v9, 0.0 }
 0x287   :  { %v568_v15 = vadd.f32 %v560_v16, %v1535_v43 }
 0x289   :  { %v659_v45 = vadd.f32 %v651_v2, %v568_v15  ;;  %v811_v2 = vpop.f32.mrf.mxu2 }
 0x28a   :  { %v548_v49 = vpop.f32.mrf.mxu3 }
 0x28b   :  { %v549_v37 = vadd.f32 %v548_v49, %v1429_v14 }
 0x28d   :  { %v561_v44 = vmax.f32 %v549_v37, 0.0 }
 0x28f   :  { %v569_v21 = vadd.f32 %v561_v44, %v1538_v6  ;;  %1086 = vmatmul.msk.bf16.gmra.mxu3 %vm241_vm2, %v1371_v59 }
 0x291   :  { %v660_v23 = vadd.f32 %v652_v52, %v569_v21 }
 0x292   :  { %v551_v56 = vpop.f32.mrf.mxu3 }
 0x293   :  { %v552_v43 = vadd.f32 %v551_v56, %v1409_v41 }
 0x295   :  { %v562_v27 = vmax.f32 %v552_v43, 0.0 }
 0x297   :  { %v570_v29 = vadd.f32 %v562_v27, %v1553_v24 }
 0x299   :  { %v661_v1 = vadd.f32 %v653_v47, %v570_v29  ;;  %v645_v47 = vadd.f32 %v644_v28, %v1449_v30 }
 0x29a   :  { %v553_v35 = vpop.f32.mrf.mxu3 }
 0x29b   :  { %v554_v19 = vadd.f32 %v553_v35, %v1449_v30 }
 0x29d   :  { %v563_v8 = vmax.f32 %v554_v19, 0.0  ;;  %v654_v19 = vmax.f32 %v645_v47, 0.0 }
 0x29f   :  { %v571_v6 = vadd.f32 %v563_v8, %v1562_v57 }
 0x2a1   :  { %v662_v0 = vadd.f32 %v654_v19, %v571_v6 }
 0x2a2   :  { %v718_v59 = vpop.f32.mrf.mxu3 }
 0x2a3   :  { %v719_v40 = vadd.f32 %v718_v59, %v1425_v3 }
 0x2a5   :  { %v738_v60 = vmax.f32 %v719_v40, 0.0 }
 0x2a7   :  { %v746_v34 = vadd.f32 %v738_v60, %v655_v33 }
 0x2a9   :  { %v837_v32 = vadd.f32 %v829_v25, %v746_v34 }
 0x2aa   :  { %v720_v31 = vpop.f32.mrf.mxu3 }
 0x2ab   :  { %v721_v24 = vadd.f32 %v720_v31, %v1496_v50 }
 0x2ad   :  { %v739_v54 = vmax.f32 %v721_v24, 0.0 }
 0x2af   :  { %v1630_v17 = vadd.f32 %v739_v54, %v656_v48 }
 0x2b2   :  { %v723_v58 = vpop.f32.mrf.mxu3 }
 0x2b3   :  { %v724_v55 = vadd.f32 %v723_v58, %v1444_v10 }
 0x2b5   :  { %v740_v57 = vmax.f32 %v724_v55, 0.0 }
 0x2b7   :  { %v1633_v7 = vadd.f32 %v740_v57, %v657_v63 }
 0x2ba   :  { %v725_v22 = vpop.f32.mrf.mxu3 }
 0x2bb   :  { %v726_v13 = vadd.f32 %v725_v22, %v1417_v62 }
 0x2bd   :  { %v741_v4 = vmax.f32 %v726_v13, 0.0 }
 0x2bf   :  { %v1636_v38 = vadd.f32 %v741_v4, %v658_v46  ;;  %v814_v46 = vpop.f32.mrf.mxu2 }
 0x2c2   :  { %v728_v33 = vpop.f32.mrf.mxu3 }
 0x2c3   :  { %v729_v18 = vadd.f32 %v728_v33, %v1461_v39 }
 0x2c5   :  { %v742_v53 = vmax.f32 %v729_v18, 0.0 }
 0x2c7   :  { %v1639_v12 = vadd.f32 %v742_v53, %v659_v45  ;;  %v816_v44 = vpop.f32.mrf.mxu2 }
 0x2c8   :  { %v817_v57 = vadd.f32 %v816_v44, %v1417_v62 }
 0x2ca   :  { %v730_v48 = vpop.f32.mrf.mxu3 }
 0x2cb   :  { %v731_v42 = vadd.f32 %v730_v48, %v1429_v14 }
 0x2cd   :  { %v743_v61 = vmax.f32 %v731_v42, 0.0 }
 0x2cf   :  { %v751_v5 = vadd.f32 %v743_v61, %v660_v23  ;;  %v819_v21 = vpop.f32.mrf.mxu2  ;;  %v832_v61 = vmax.f32 %v817_v57, 0.0 }
 0x2d0   :  { %v820_v31 = vadd.f32 %v819_v21, %v1461_v39 }
 0x2d2   :  { %v733_v11 = vpop.f32.mrf.mxu3  ;;  %v833_v18 = vmax.f32 %v820_v31, 0.0 }
 0x2d3   :  { %v734_v63 = vadd.f32 %v733_v11, %v1409_v41 }
 0x2d5   :  { %v744_v9 = vmax.f32 %v734_v63, 0.0 }
 0x2d7   :  { %v752_v16 = vadd.f32 %v744_v9, %v661_v1  ;;  %v821_v23 = vpop.f32.mrf.mxu2 }
 0x2d8   :  { %v822_v60 = vadd.f32 %v821_v23, %v1429_v14 }
 0x2da   :  { %v735_v15 = vpop.f32.mrf.mxu3  ;;  %v834_v22 = vmax.f32 %v822_v60, 0.0 }
 0x2db   :  { %v736_v29 = vadd.f32 %v735_v15, %v1449_v30 }
 0x2dc   :  { %v842_v48 = vadd.f32 %v834_v22, %v751_v5 }
 0x2df   :  { %v824_v43 = vpop.f32.mrf.mxu2 }
 0x2e0   :  { %v825_v59 = vadd.f32 %v824_v43, %v1409_v41 }
 0x2e2   :  { %v900_v49 = vpop.f32.mrf.mxu3  ;;  %v835_v24 = vmax.f32 %v825_v59, 0.0 }
 0x2e3   :  { %v901_v20 = vadd.f32 %v900_v49, %v1425_v3  ;;  %v745_v3 = vmax.f32 %v736_v29, 0.0 }
 0x2e4   :  { %v843_v4 = vadd.f32 %v835_v24, %v752_v16 }
 0x2e5   :  { %v920_v37 = vmax.f32 %v901_v20, 0.0  ;;  %v753_v36 = vadd.f32 %v745_v3, %v662_v0 }
 0x2e7   :  { %v1644_v51 = vadd.f32 %v920_v37, %v837_v32  ;;  %v826_v35 = vpop.f32.mrf.mxu2 }
 0x2e8   :  { %v827_v8 = vadd.f32 %v826_v35, %v1449_v30 }
 0x2ea   :  { %v902_v45 = vpop.f32.mrf.mxu3  ;;  %v836_v34 = vmax.f32 %v827_v8, 0.0 }
 0x2eb   :  { %v903_v11 = vadd.f32 %v902_v45, %v1496_v50 }
 0x2ec   :  { %v844_v6 = vadd.f32 %v836_v34, %v753_v36 }
 0x2ed   :  { %v921_v5 = vmax.f32 %v903_v11, 0.0 }
 0x2f2   :  { %v905_v52 = vpop.f32.mrf.mxu3 }
 0x2fa   :  { %v907_v56 = vpop.f32.mrf.mxu3 }
 0x302   :  { %v910_v26 = vpop.f32.mrf.mxu3 }
 0x303   :  { %v911_v54 = vadd.f32 %v910_v26, %v1461_v39  ;;  %v812_v39 = vadd.f32 %v811_v2, %v1496_v50 }
 0x305   :  { %v924_v53 = vmax.f32 %v911_v54, 0.0 }
 0x30a   :  { %v912_v27 = vpop.f32.mrf.mxu3 }
 0x30b   :  { %v913_v28 = vadd.f32 %v912_v27, %v1429_v14  ;;  %v815_v14 = vadd.f32 %v814_v46, %v1444_v10  ;;  %v840_v46 = vadd.f32 %v832_v61, %v1636_v38  ;;  %v941_v38 = vpop.permute.xlu1 %940 }
 0x30d   :  { %v925_v13 = vmax.f32 %v913_v28, 0.0  ;;  %v831_v16 = vmax.f32 %v815_v14, 0.0 }
 0x30f   :  { %v933_v9 = vadd.f32 %v925_v13, %v842_v48  ;;  %v839_v20 = vadd.f32 %v831_v16, %v1633_v7 }
 0x312   :  { %v915_v1 = vpop.f32.mrf.mxu3 }
 0x313   :  { %v916_v40 = vadd.f32 %v915_v1, %v1409_v41  ;;  %v908_v41 = vadd.f32 %v907_v56, %v1417_v62  ;;  %v841_v62 = vadd.f32 %v833_v18, %v1639_v12  ;;  %v936_v12 = vld [vmem:[%s1679_s5] sm:$0x1] }
 0x315   :  { %v926_v58 = vmax.f32 %v916_v40, 0.0  ;;  %v923_v63 = vmax.f32 %v908_v41, 0.0  ;;  %v932_v49 = vadd.f32 %v924_v53, %v841_v62 }
 0x317   :  { %v934_v42 = vadd.f32 %v926_v58, %v843_v4  ;;  %v931_v37 = vadd.f32 %v923_v63, %v840_v46 }
 0x31a   :  { %v917_v25 = vpop.f32.mrf.mxu3 }
 0x31b   :  { %v918_v32 = vadd.f32 %v917_v25, %v1449_v30  ;;  %v906_v30 = vadd.f32 %v905_v52, %v1444_v10  ;;  %v830_v10 = vmax.f32 %v812_v39, 0.0 }
 0x31d   :  { %v927_v55 = vmax.f32 %v918_v32, 0.0  ;;  %v922_v15 = vmax.f32 %v906_v30, 0.0  ;;  %v838_v2 = vadd.f32 %v830_v10, %v1630_v17  ;;  %v943_v17 = vperm.slane %v941_v38, 0 }
 0x31f   :  { %v935_v33 = vadd.f32 %v927_v55, %v844_v6  ;;  %v930_v50 = vadd.f32 %v922_v15, %v839_v20  ;;  %v929_v45 = vadd.f32 %v921_v5, %v838_v2 }
 0x321   :  { %955 = vmatpush.msra.mxu0 %v935_v33 }
 0x323   :  { %956 = vmatpush.msra.mxu0 %v934_v42 }
 0x325   :  { %957 = vmatpush.msra.mxu0 %v933_v9 }
 0x327   :  { %958 = vmatpush.msra.mxu0 %v932_v49 }
 0x329   :  { %959 = vmatpush.msra.mxu0 %v931_v37 }
 0x32b   :  { %960 = vmatpush.msra.mxu0 %v930_v50 }
 0x32d   :  { %961 = vmatpush.msra.mxu0 %v929_v45 }
 0x32f   :  { %962 = vmatpush.msra.mxu0 %v1644_v51 }
 0x330   :  { %1087 = vmatmul.msk.f32.vlgmr.msra.gmra.mxu0 %vm241_vm2, %v936_v12 }
 0x3ad   :  { %v964_v7 = vpop.f32.mrf.mxu0 }
 0x3ae   :  { %v965_v44 = vadd.f32 %v964_v7, %v943_v17 }
 0x3b0   :  { %967 = vst [vmem:[#allocation3] sm:$0x1] %v965_v44 }
 0x3b1   :  { %978 = dma.vmem_to_hbm [thread:$0]  %s974_s15, 16, %s976_s18, [#allocation4]  }
 0x3b2   :  { %1125 = dma.done.wait [#allocation4], 16  }
 0x3b3   :  { %1126 = vsyncadd [#allocation4], 4294967280 }
 0x3b4   :  { %983 = vsyncpa [#allocation4], 1 }

</bundles_post_ra>
